<compile_context>
chip_gen: v7x
topology: tpu7x:2x2x1
jax: 0.10.0
libtpu: 0.0.40
codegen_flags: <defaults>
</compile_context>

<pallas_src>
import functools
import math

import jax
import jax.numpy as jnp
from jax.experimental import pallas as pl
from jax.experimental.pallas import tpu as pltpu

D = 128       # embedding_dim
H = 8         # n_heads
DK = D // H   # key/value dim per head (16)
FF = 512      # feed-forward hidden size
EPS = 1e-5    # nn.LayerNorm default eps


def _norm(x):
    """LayerNorm without the affine part (affine is folded into the weights)."""
    mu = jnp.mean(x, axis=-1, keepdims=True)
    var = jnp.mean(jnp.square(x - mu), axis=-1, keepdims=True)
    return (x - mu) * jax.lax.rsqrt(var + EPS)


def decoder_kernel(tgt_ref, mem_ref,
                   wq_ref, bq_ref, wkv_ref, bkv_ref, wo_ref,
                   w1_ref, b1_ref, w2_ref, b2_ref,
                   out_ref, tgt_acc, mem_hat_sc,
                   *, batch, n_query, n_src, compute_dtype):
    l = pl.program_id(0)
    cd = compute_dtype
    scale = 1.0 / math.sqrt(DK)

    def mm(a, b):
        return jnp.dot(a.astype(cd), b.astype(cd),
                       preferred_element_type=jnp.float32)

    @pl.when(l == 0)
    def _():
        # tgt accumulator stays resident in f32 VMEM across all layers; the
        # memory-side normalization is layer-invariant (its per-layer affine
        # is folded into wkv) so it is computed exactly once.
        tgt_acc[...] = tgt_ref[...].astype(jnp.float32)
        mem_hat_sc[...] = _norm(mem_ref[...].astype(jnp.float32))

    tgt = tgt_acc[...]                       # (B*Nq, D)
    mem_hat = mem_hat_sc[...]                # (B*Ns, D)

    # ---- multi-head attention --------------------------------------------
    tgt_hat = _norm(tgt)
    q_all = mm(tgt_hat, wq_ref[...]) + bq_ref[...]      # (B*Nq, H*DK)
    kv = mm(mem_hat, wkv_ref[...]) + bkv_ref[...]       # (B*Ns, 2*H*DK)

    # Layout change (b,n,(h,d)) -> ((h,b),n,d): per-head lane slices stacked
    # on a new leading axis (a general 4-D transpose does not lower in
    # Mosaic), then leading-dims-only reshapes to merge (h,b).
    q3 = jnp.stack([q_all[:, h * DK:(h + 1) * DK] for h in range(H)], axis=0)
    k3 = jnp.stack([kv[:, h * DK:(h + 1) * DK] for h in range(H)], axis=0)
    v3 = jnp.stack([kv[:, D + h * DK:D + (h + 1) * DK] for h in range(H)], axis=0)
    q3 = q3.reshape(H * batch, n_query, DK)
    k3 = k3.reshape(H * batch, n_src, DK)
    v3 = v3.reshape(H * batch, n_src, DK)

    # ONE batched score einsum + ONE softmax + ONE attn@V for all heads/batches.
    u = scale * jnp.einsum('gqd,gsd->gqs', q3.astype(cd), k3.astype(cd),
                           preferred_element_type=jnp.float32)
    u = u - jnp.max(u, axis=-1, keepdims=True)
    p = jnp.exp(u)
    attn = p / jnp.sum(p, axis=-1, keepdims=True)
    heads = jnp.einsum('gqs,gsd->gqd', attn.astype(cd), v3.astype(cd),
                       preferred_element_type=jnp.float32)   # (H*B, Nq, DK)

    # ((h,b),n,d) -> ((b,n),(h,d)), then ONE fused output projection.
    heads = heads.reshape(H, batch * n_query, DK)
    heads_cat = jnp.concatenate([heads[h] for h in range(H)], axis=-1)
    attn_out = mm(heads_cat, wo_ref[...])                     # (B*Nq, D)

    # ---- residual + feed-forward -------------------------------------------
    h1 = attn_out + tgt
    h_hat = _norm(h1)
    ff = mm(h_hat, w1_ref[...]) + b1_ref[...]
    ff = jnp.maximum(ff, 0.0)
    ff = mm(ff, w2_ref[...]) + b2_ref[...]
    new_tgt = ff + h1

    tgt_acc[...] = new_tgt
    # Output block index never changes -> only the final value reaches HBM.
    out_ref[...] = new_tgt.astype(out_ref.dtype)


def init_decoder_params(key, n_layer=1):
    """PyTorch-shaped params per layer (MHA init: uniform(+-1/sqrt(last dim))).
    The LayerNorm affines are given small random (non-default) values so the
    affine->weight folding is exercised by the numerical check (nn.LayerNorm's
    default init would be weight=1, bias=0)."""
    u = jax.random.uniform
    layers = []
    for _ in range(n_layer):
        key, *ks = jax.random.split(key, 13)
        s_attn = 1.0 / math.sqrt(DK)
        s_out = 1.0 / math.sqrt(D)
        s1 = 1.0 / math.sqrt(D)        # nn.Linear(D, 512)
        s2 = 1.0 / math.sqrt(FF)       # nn.Linear(512, D)
        layers.append(dict(
            ln1_w=1.0 + u(ks[0], (D,), jnp.float32, -0.1, 0.1),
            ln1_b=u(ks[1], (D,), jnp.float32, -0.1, 0.1),
            wq=u(ks[2], (H, D, DK), jnp.float32, -s_attn, s_attn),
            wk=u(ks[3], (H, D, DK), jnp.float32, -s_attn, s_attn),
            wv=u(ks[4], (H, D, DK), jnp.float32, -s_attn, s_attn),
            wo=u(ks[5], (H, DK, D), jnp.float32, -s_out, s_out),
            ln2_w=1.0 + u(ks[6], (D,), jnp.float32, -0.1, 0.1),
            ln2_b=u(ks[7], (D,), jnp.float32, -0.1, 0.1),
            w1=u(ks[8], (D, FF), jnp.float32, -s1, s1),    # stored (in, out)
            b1=u(ks[9], (FF,), jnp.float32, -s1, s1),
            w2=u(ks[10], (FF, D), jnp.float32, -s2, s2),
            b2=u(ks[11], (D,), jnp.float32, -s2, s2),
        ))
    return layers


def pack_params(layer_params, matmul_dtype=jnp.float32):
    """Fuse per-head weights into lane-dense matrices, fold the LayerNorm
    affines into the adjacent matmuls, and stack along a leading layer axis
    for grid streaming."""
    f32 = jnp.float32
    per = {k: [] for k in ('wq', 'bq', 'wkv', 'bkv', 'wo', 'w1', 'b1', 'w2', 'b2')}
    for p in layer_params:
        # (H, D, DK) -> (D, H*DK): column h*DK+k == head h, feature k (matches
        # torch heads.permute(1,2,0,3).reshape(-1, H*DK) column order).
        wq_d = jnp.transpose(p['wq'], (1, 0, 2)).reshape(D, H * DK)
        wk_d = jnp.transpose(p['wk'], (1, 0, 2)).reshape(D, H * DK)
        wv_d = jnp.transpose(p['wv'], (1, 0, 2)).reshape(D, H * DK)
        ln1_w, ln1_b = p['ln1_w'], p['ln1_b']
        ln2_w, ln2_b = p['ln2_w'], p['ln2_b']
        # Fold ln1 affine:  (x_hat*w + b) @ W  ==  x_hat @ (w[:,None]*W) + b@W
        per['wq'].append(ln1_w[:, None] * wq_d)
        per['bq'].append(ln1_b @ wq_d)
        per['wkv'].append(jnp.concatenate(
            [ln1_w[:, None] * wk_d, ln1_w[:, None] * wv_d], axis=1))
        per['bkv'].append(jnp.concatenate([ln1_b @ wk_d, ln1_b @ wv_d], axis=0))
        per['wo'].append(p['wo'].reshape(H * DK, D))   # == torch w_out.view(-1, D)
        # Fold ln2 affine into the first FFN linear.
        per['w1'].append(ln2_w[:, None] * p['w1'])
        per['b1'].append(ln2_b @ p['w1'] + p['b1'])
        per['w2'].append(p['w2'])
        per['b2'].append(p['b2'])

    def stack(name, dt, as_row=False):
        xs = per[name]
        if as_row:
            xs = [x.reshape(1, -1) for x in xs]
        return jnp.stack(xs).astype(dt)

    return (stack('wq', matmul_dtype), stack('bq', f32, as_row=True),
            stack('wkv', matmul_dtype), stack('bkv', f32, as_row=True),
            stack('wo', matmul_dtype),
            stack('w1', matmul_dtype), stack('b1', f32, as_row=True),
            stack('w2', matmul_dtype), stack('b2', f32, as_row=True))


def decoder_forward(tgt, memory, layer_params, compute_dtype=jnp.float32):
    B, Nq, d = tgt.shape
    Bm, Ns, d2 = memory.shape
    assert d == D and d2 == D and Bm == B
    n_layer = len(layer_params)
    packed = pack_params(layer_params, matmul_dtype=compute_dtype)

    tgt2 = tgt.reshape(B * Nq, D)        # batch folded into sublane rows
    mem2 = memory.reshape(B * Ns, D)

    kernel = functools.partial(
        decoder_kernel, batch=B, n_query=Nq, n_src=Ns,
        compute_dtype=compute_dtype)

    def layer_spec(arr):
        # One layer's slice per grid step; leading L axis squeezed away.
        return pl.BlockSpec((None,) + arr.shape[1:], lambda l: (l, 0, 0))

    in_specs = ([pl.BlockSpec((B * Nq, D), lambda l: (0, 0)),
                 pl.BlockSpec((B * Ns, D), lambda l: (0, 0))]
                + [layer_spec(p) for p in packed])

    # Advisory cost hint so XLA schedules surrounding ops sensibly.
    bn, bs, g = B * Nq, B * Ns, B * H
    flops_layer = 2 * (bn * D * D + bs * D * 2 * D + 2 * g * Nq * Ns * DK
                       + bn * D * D + 2 * bn * D * FF)
    trans_layer = g * Nq * Ns + 2 * bn + bs
    weight_bytes = sum(int(p.size) * p.dtype.itemsize for p in packed)
    io_bytes = (tgt2.size + mem2.size + tgt2.size) * tgt.dtype.itemsize
    cost = pl.CostEstimate(flops=n_layer * flops_layer,
                           transcendentals=n_layer * trans_layer,
                           bytes_accessed=int(weight_bytes + io_bytes))

    out2 = pl.pallas_call(
        kernel,
        out_shape=jax.ShapeDtypeStruct((B * Nq, D), tgt.dtype),
        grid_spec=pltpu.PrefetchScalarGridSpec(
            num_scalar_prefetch=0,
            grid=(n_layer,),
            in_specs=in_specs,
            out_specs=pl.BlockSpec((B * Nq, D), lambda l: (0, 0)),
            scratch_shapes=[pltpu.VMEM((B * Nq, D), jnp.float32),
                            pltpu.VMEM((B * Ns, D), jnp.float32)]),
        compiler_params=pltpu.CompilerParams(
            dimension_semantics=("arbitrary",)),   # layer l+1 depends on l
        cost_estimate=cost,
    )(tgt2, mem2, *packed)
    return out2.reshape(B, Nq, D)


def decoder_reference(tgt, memory, layer_params):
    """Pure-JAX reference matching the PyTorch forward semantics (mask=None),
    using the original per-head (H, D, DK) / (H, DK, D) parameter layout."""
    def ln(x, w, b):
        mu = x.mean(-1, keepdims=True)
        var = ((x - mu) ** 2).mean(-1, keepdims=True)
        return (x - mu) / jnp.sqrt(var + EPS) * w + b

    for p in layer_params:
        tgt_n = ln(tgt, p['ln1_w'], p['ln1_b'])
        mem_n = ln(memory, p['ln1_w'], p['ln1_b'])
        Q = jnp.einsum('bnd,hdk->hbnk', tgt_n, p['wq'])
        K = jnp.einsum('bsd,hdk->hbsk', mem_n, p['wk'])
        V = jnp.einsum('bsd,hdv->hbsv', mem_n, p['wv'])
        U = (1.0 / math.sqrt(DK)) * jnp.einsum('hbnk,hbsk->hbns', Q, K)
        A = jax.nn.softmax(U, axis=-1)
        heads = jnp.einsum('hbns,hbsv->hbnv', A, V)
        out = jnp.einsum('hbnv,hvd->bnd', heads, p['wo'])
        h1 = out + tgt
        hn = ln(h1, p['ln2_w'], p['ln2_b'])
        ffn = jnp.maximum(hn @ p['w1'] + p['b1'], 0.0) @ p['w2'] + p['b2']
        tgt = ffn + h1
    return tgt


if __name__ == "__main__":
    key = jax.random.PRNGKey(0)
    k_tgt, k_mem, k_par = jax.random.split(key, 3)

    B, NQ, NS, N_LAYER = 2, 4, 8, 2
    tgt = jax.random.normal(k_tgt, (B, NQ, D), jnp.float32)
    memory = jax.random.normal(k_mem, (B, NS, D), jnp.float32)
    params = init_decoder_params(k_par, n_layer=N_LAYER)

    ref = decoder_reference(tgt, memory, params)

    # f32 path (tight check).
    out = jax.block_until_ready(decoder_forward(tgt, memory, params))
    if not bool(jnp.allclose(out, ref, rtol=5e-4, atol=5e-4)):
        err = float(jnp.max(jnp.abs(out - ref)))
        raise AssertionError(
            f"Pallas decoder (f32) mismatch vs JAX reference (max abs err {err})")

    # bf16 weight path (v6e/v7x perf path) -- loose tolerance.
    out_bf16 = jax.block_until_ready(
        decoder_forward(tgt, memory, params, compute_dtype=jnp.bfloat16))
    if not bool(jnp.allclose(out_bf16, ref, rtol=5e-2, atol=1e-1)):
        err = float(jnp.max(jnp.abs(out_bf16 - ref)))
        raise AssertionError(
            f"Pallas decoder (bf16) mismatch vs JAX reference (max abs err {err})")

    print("KERNEL_OK")
</pallas_src>

<mosaic_0001>
module attributes {stable_mosaic.version = 11 : i64} {
  func.func @decoder_kernel(%arg0: i32, %arg1: memref<8x128xf32, #tpu.memory_space<vmem>>, %arg2: memref<16x128xf32, #tpu.memory_space<vmem>>, %arg3: memref<1x128x128xf32, #tpu.memory_space<vmem>>, %arg4: memref<1x1x128xf32, #tpu.memory_space<vmem>>, %arg5: memref<1x128x256xf32, #tpu.memory_space<vmem>>, %arg6: memref<1x1x256xf32, #tpu.memory_space<vmem>>, %arg7: memref<1x128x128xf32, #tpu.memory_space<vmem>>, %arg8: memref<1x128x512xf32, #tpu.memory_space<vmem>>, %arg9: memref<1x1x512xf32, #tpu.memory_space<vmem>>, %arg10: memref<1x512x128xf32, #tpu.memory_space<vmem>>, %arg11: memref<1x1x128xf32, #tpu.memory_space<vmem>>, %arg12: memref<8x128xf32, #tpu.memory_space<vmem>>, %arg13: memref<8x128xf32, #tpu.memory_space<vmem>>, %arg14: memref<16x128xf32, #tpu.memory_space<vmem>>) attributes {dimension_semantics = [#tpu.dimension_semantics<arbitrary>], iteration_bounds = array<i64: 2>, scalar_prefetch = 0 : i64, scratch_operands = 2 : i64, tpu.core_type = #tpu.core_type<tc>, window_params = [{pipeline_mode = #tpu.pipeline_mode<synchronous>, transform_indices = @transform_0, window_bounds = array<i64: 8, 128>}, {pipeline_mode = #tpu.pipeline_mode<synchronous>, transform_indices = @transform_1, window_bounds = array<i64: 16, 128>}, {transform_indices = @transform_2, window_bounds = array<i64: 1, 128, 128>}, {transform_indices = @transform_3, window_bounds = array<i64: 1, 1, 128>}, {transform_indices = @transform_4, window_bounds = array<i64: 1, 128, 256>}, {transform_indices = @transform_5, window_bounds = array<i64: 1, 1, 256>}, {transform_indices = @transform_6, window_bounds = array<i64: 1, 128, 128>}, {transform_indices = @transform_7, window_bounds = array<i64: 1, 128, 512>}, {transform_indices = @transform_8, window_bounds = array<i64: 1, 1, 512>}, {transform_indices = @transform_9, window_bounds = array<i64: 1, 512, 128>}, {transform_indices = @transform_10, window_bounds = array<i64: 1, 1, 128>}, {pipeline_mode = #tpu.pipeline_mode<synchronous>, transform_indices = @transform_11, window_bounds = array<i64: 8, 128>}]} {
    %c0_i32 = arith.constant 0 : i32
    %0 = arith.cmpi eq, %arg0, %c0_i32 : i32
    %1 = arith.extui %0 : i1 to i32
    %c0_i32_0 = arith.constant 0 : i32
    %2 = arith.cmpi ne, %1, %c0_i32_0 : i32
    scf.if %2 {
      %c0_55 = arith.constant 0 : index
      %c0_56 = arith.constant 0 : index
      %163 = vector.load %arg1[%c0_55, %c0_56] : memref<8x128xf32, #tpu.memory_space<vmem>>, vector<8x128xf32>
      %c0_57 = arith.constant 0 : index
      %c0_58 = arith.constant 0 : index
      %164 = vector.load %arg13[%c0_57, %c0_58] : memref<8x128xf32, #tpu.memory_space<vmem>>, vector<8x128xf32>
      tpu.vector_store %arg13[%c0_57, %c0_58], %163 {strides = array<i32>} : memref<8x128xf32, #tpu.memory_space<vmem>>, vector<8x128xf32>,
      %c0_59 = arith.constant 0 : index
      %c0_60 = arith.constant 0 : index
      %165 = vector.load %arg2[%c0_59, %c0_60] : memref<16x128xf32, #tpu.memory_space<vmem>>, vector<16x128xf32>
      %cst_61 = arith.constant dense<0.000000e+00> : vector<16xf32>
      %166 = vector.multi_reduction <add>, %165, %cst_61 [1] : vector<16x128xf32> to vector<16xf32>
      %167 = vector.shape_cast %166 : vector<16xf32> to vector<16x1xf32>
      %cst_62 = arith.constant 1.280000e+02 : f32
      %168 = vector.broadcast %cst_62 : f32 to vector<16x1xf32>
      %169 = arith.divf %167, %168 : vector<16x1xf32>
      %170 = vector.broadcast %169 : vector<16x1xf32> to vector<16x128xf32>
      %171 = arith.subf %165, %170 : vector<16x128xf32>
      %172 = arith.mulf %171, %171 : vector<16x128xf32>
      %cst_63 = arith.constant dense<0.000000e+00> : vector<16xf32>
      %173 = vector.multi_reduction <add>, %172, %cst_63 [1] : vector<16x128xf32> to vector<16xf32>
      %174 = vector.shape_cast %173 : vector<16xf32> to vector<16x1xf32>
      %cst_64 = arith.constant 1.280000e+02 : f32
      %175 = vector.broadcast %cst_64 : f32 to vector<16x1xf32>
      %176 = arith.divf %174, %175 : vector<16x1xf32>
      %177 = vector.broadcast %169 : vector<16x1xf32> to vector<16x128xf32>
      %178 = arith.subf %165, %177 : vector<16x128xf32>
      %cst_65 = arith.constant 9.99999974E-6 : f32
      %179 = vector.broadcast %cst_65 : f32 to vector<16x1xf32>
      %180 = arith.addf %176, %179 : vector<16x1xf32>
      %181 = math.rsqrt %180 : vector<16x1xf32>
      %182 = vector.broadcast %181 : vector<16x1xf32> to vector<16x128xf32>
      %183 = arith.mulf %178, %182 : vector<16x128xf32>
      %c0_66 = arith.constant 0 : index
      %c0_67 = arith.constant 0 : index
      %184 = vector.load %arg14[%c0_66, %c0_67] : memref<16x128xf32, #tpu.memory_space<vmem>>, vector<16x128xf32>
      tpu.vector_store %arg14[%c0_66, %c0_67], %183 {strides = array<i32>} : memref<16x128xf32, #tpu.memory_space<vmem>>, vector<16x128xf32>,
    } else {
    }
    %c0 = arith.constant 0 : index
    %c0_1 = arith.constant 0 : index
    %3 = vector.load %arg13[%c0, %c0_1] : memref<8x128xf32, #tpu.memory_space<vmem>>, vector<8x128xf32>
    %c0_2 = arith.constant 0 : index
    %c0_3 = arith.constant 0 : index
    %4 = vector.load %arg14[%c0_2, %c0_3] : memref<16x128xf32, #tpu.memory_space<vmem>>, vector<16x128xf32>
    %cst = arith.constant dense<0.000000e+00> : vector<8xf32>
    %5 = vector.multi_reduction <add>, %3, %cst [1] : vector<8x128xf32> to vector<8xf32>
    %6 = vector.shape_cast %5 : vector<8xf32> to vector<8x1xf32>
    %cst_4 = arith.constant 1.280000e+02 : f32
    %7 = vector.broadcast %cst_4 : f32 to vector<8x1xf32>
    %8 = arith.divf %6, %7 : vector<8x1xf32>
    %9 = vector.broadcast %8 : vector<8x1xf32> to vector<8x128xf32>
    %10 = arith.subf %3, %9 : vector<8x128xf32>
    %11 = arith.mulf %10, %10 : vector<8x128xf32>
    %cst_5 = arith.constant dense<0.000000e+00> : vector<8xf32>
    %12 = vector.multi_reduction <add>, %11, %cst_5 [1] : vector<8x128xf32> to vector<8xf32>
    %13 = vector.shape_cast %12 : vector<8xf32> to vector<8x1xf32>
    %cst_6 = arith.constant 1.280000e+02 : f32
    %14 = vector.broadcast %cst_6 : f32 to vector<8x1xf32>
    %15 = arith.divf %13, %14 : vector<8x1xf32>
    %16 = vector.broadcast %8 : vector<8x1xf32> to vector<8x128xf32>
    %17 = arith.subf %3, %16 : vector<8x128xf32>
    %cst_7 = arith.constant 9.99999974E-6 : f32
    %18 = vector.broadcast %cst_7 : f32 to vector<8x1xf32>
    %19 = arith.addf %15, %18 : vector<8x1xf32>
    %20 = math.rsqrt %19 : vector<8x1xf32>
    %21 = vector.broadcast %20 : vector<8x1xf32> to vector<8x128xf32>
    %22 = arith.mulf %17, %21 : vector<8x128xf32>
    %c0_8 = arith.constant 0 : index
    %c0_9 = arith.constant 0 : index
    %c0_10 = arith.constant 0 : index
    %23 = vector.load %arg3[%c0_8, %c0_9, %c0_10] : memref<1x128x128xf32, #tpu.memory_space<vmem>>, vector<1x128x128xf32>
    %24 = vector.shape_cast %23 : vector<1x128x128xf32> to vector<128x128xf32>
    %cst_11 = arith.constant dense<0.000000e+00> : vector<8x128xf32>
    %25 = tpu.matmul %22, %24, %cst_11 {dimension_numbers = #tpu.dot_dimension_numbers<[1], [0], [0], [1], [0, 0, 1, 1], [], []>} : vector<8x128xf32>, vector<128x128xf32>, vector<8x128xf32> -> vector<8x128xf32>
    %c0_12 = arith.constant 0 : index
    %c0_13 = arith.constant 0 : index
    %c0_14 = arith.constant 0 : index
    %26 = vector.load %arg4[%c0_12, %c0_13, %c0_14] : memref<1x1x128xf32, #tpu.memory_space<vmem>>, vector<1x1x128xf32>
    %27 = vector.shape_cast %26 : vector<1x1x128xf32> to vector<1x128xf32>
    %28 = vector.broadcast %27 : vector<1x128xf32> to vector<8x128xf32>
    %29 = arith.addf %25, %28 : vector<8x128xf32>
    %c0_15 = arith.constant 0 : index
    %c0_16 = arith.constant 0 : index
    %c0_17 = arith.constant 0 : index
    %30 = vector.load %arg5[%c0_15, %c0_16, %c0_17] : memref<1x128x256xf32, #tpu.memory_space<vmem>>, vector<1x128x256xf32>
    %31 = vector.shape_cast %30 : vector<1x128x256xf32> to vector<128x256xf32>
    %cst_18 = arith.constant dense<0.000000e+00> : vector<16x256xf32>
    %32 = tpu.matmul %4, %31, %cst_18 {dimension_numbers = #tpu.dot_dimension_numbers<[1], [0], [0], [1], [0, 0, 1, 1], [], []>} : vector<16x128xf32>, vector<128x256xf32>, vector<16x256xf32> -> vector<16x256xf32>
    %c0_19 = arith.constant 0 : index
    %c0_20 = arith.constant 0 : index
    %c0_21 = arith.constant 0 : index
    %33 = vector.load %arg6[%c0_19, %c0_20, %c0_21] : memref<1x1x256xf32, #tpu.memory_space<vmem>>, vector<1x1x256xf32>
    %34 = vector.shape_cast %33 : vector<1x1x256xf32> to vector<1x256xf32>
    %35 = vector.broadcast %34 : vector<1x256xf32> to vector<16x256xf32>
    %36 = arith.addf %32, %35 : vector<16x256xf32>
    %37 = vector.extract_strided_slice %29 {offsets = [0, 0], sizes = [8, 16], strides = [1, 1]} : vector<8x128xf32> to vector<8x16xf32>
    %38 = vector.extract_strided_slice %29 {offsets = [0, 16], sizes = [8, 16], strides = [1, 1]} : vector<8x128xf32> to vector<8x16xf32>
    %39 = vector.extract_strided_slice %29 {offsets = [0, 32], sizes = [8, 16], strides = [1, 1]} : vector<8x128xf32> to vector<8x16xf32>
    %40 = vector.extract_strided_slice %29 {offsets = [0, 48], sizes = [8, 16], strides = [1, 1]} : vector<8x128xf32> to vector<8x16xf32>
    %41 = vector.extract_strided_slice %29 {offsets = [0, 64], sizes = [8, 16], strides = [1, 1]} : vector<8x128xf32> to vector<8x16xf32>
    %42 = vector.extract_strided_slice %29 {offsets = [0, 80], sizes = [8, 16], strides = [1, 1]} : vector<8x128xf32> to vector<8x16xf32>
    %43 = vector.extract_strided_slice %29 {offsets = [0, 96], sizes = [8, 16], strides = [1, 1]} : vector<8x128xf32> to vector<8x16xf32>
    %44 = vector.extract_strided_slice %29 {offsets = [0, 112], sizes = [8, 16], strides = [1, 1]} : vector<8x128xf32> to vector<8x16xf32>
    %45 = vector.shape_cast %37 : vector<8x16xf32> to vector<1x8x16xf32>
    %46 = vector.shape_cast %38 : vector<8x16xf32> to vector<1x8x16xf32>
    %47 = vector.shape_cast %39 : vector<8x16xf32> to vector<1x8x16xf32>
    %48 = vector.shape_cast %40 : vector<8x16xf32> to vector<1x8x16xf32>
    %49 = vector.shape_cast %41 : vector<8x16xf32> to vector<1x8x16xf32>
    %50 = vector.shape_cast %42 : vector<8x16xf32> to vector<1x8x16xf32>
    %51 = vector.shape_cast %43 : vector<8x16xf32> to vector<1x8x16xf32>
    %52 = vector.shape_cast %44 : vector<8x16xf32> to vector<1x8x16xf32>
    %53 = tpu.concatenate %45, %46, %47, %48, %49, %50, %51, %52 in 0 : vector<1x8x16xf32>, vector<1x8x16xf32>, vector<1x8x16xf32>, vector<1x8x16xf32>, vector<1x8x16xf32>, vector<1x8x16xf32>, vector<1x8x16xf32>, vector<1x8x16xf32> -> vector<8x8x16xf32>
    %54 = vector.extract_strided_slice %36 {offsets = [0, 0], sizes = [16, 16], strides = [1, 1]} : vector<16x256xf32> to vector<16x16xf32>
    %55 = vector.extract_strided_slice %36 {offsets = [0, 16], sizes = [16, 16], strides = [1, 1]} : vector<16x256xf32> to vector<16x16xf32>
    %56 = vector.extract_strided_slice %36 {offsets = [0, 32], sizes = [16, 16], strides = [1, 1]} : vector<16x256xf32> to vector<16x16xf32>
    %57 = vector.extract_strided_slice %36 {offsets = [0, 48], sizes = [16, 16], strides = [1, 1]} : vector<16x256xf32> to vector<16x16xf32>
    %58 = vector.extract_strided_slice %36 {offsets = [0, 64], sizes = [16, 16], strides = [1, 1]} : vector<16x256xf32> to vector<16x16xf32>
    %59 = vector.extract_strided_slice %36 {offsets = [0, 80], sizes = [16, 16], strides = [1, 1]} : vector<16x256xf32> to vector<16x16xf32>
    %60 = vector.extract_strided_slice %36 {offsets = [0, 96], sizes = [16, 16], strides = [1, 1]} : vector<16x256xf32> to vector<16x16xf32>
    %61 = vector.extract_strided_slice %36 {offsets = [0, 112], sizes = [16, 16], strides = [1, 1]} : vector<16x256xf32> to vector<16x16xf32>
    %62 = vector.shape_cast %54 : vector<16x16xf32> to vector<1x16x16xf32>
    %63 = vector.shape_cast %55 : vector<16x16xf32> to vector<1x16x16xf32>
    %64 = vector.shape_cast %56 : vector<16x16xf32> to vector<1x16x16xf32>
    %65 = vector.shape_cast %57 : vector<16x16xf32> to vector<1x16x16xf32>
    %66 = vector.shape_cast %58 : vector<16x16xf32> to vector<1x16x16xf32>
    %67 = vector.shape_cast %59 : vector<16x16xf32> to vector<1x16x16xf32>
    %68 = vector.shape_cast %60 : vector<16x16xf32> to vector<1x16x16xf32>
    %69 = vector.shape_cast %61 : vector<16x16xf32> to vector<1x16x16xf32>
    %70 = tpu.concatenate %62, %63, %64, %65, %66, %67, %68, %69 in 0 : vector<1x16x16xf32>, vector<1x16x16xf32>, vector<1x16x16xf32>, vector<1x16x16xf32>, vector<1x16x16xf32>, vector<1x16x16xf32>, vector<1x16x16xf32>, vector<1x16x16xf32> -> vector<8x16x16xf32>
    %71 = vector.extract_strided_slice %36 {offsets = [0, 128], sizes = [16, 16], strides = [1, 1]} : vector<16x256xf32> to vector<16x16xf32>
    %72 = vector.extract_strided_slice %36 {offsets = [0, 144], sizes = [16, 16], strides = [1, 1]} : vector<16x256xf32> to vector<16x16xf32>
    %73 = vector.extract_strided_slice %36 {offsets = [0, 160], sizes = [16, 16], strides = [1, 1]} : vector<16x256xf32> to vector<16x16xf32>
    %74 = vector.extract_strided_slice %36 {offsets = [0, 176], sizes = [16, 16], strides = [1, 1]} : vector<16x256xf32> to vector<16x16xf32>
    %75 = vector.extract_strided_slice %36 {offsets = [0, 192], sizes = [16, 16], strides = [1, 1]} : vector<16x256xf32> to vector<16x16xf32>
    %76 = vector.extract_strided_slice %36 {offsets = [0, 208], sizes = [16, 16], strides = [1, 1]} : vector<16x256xf32> to vector<16x16xf32>
    %77 = vector.extract_strided_slice %36 {offsets = [0, 224], sizes = [16, 16], strides = [1, 1]} : vector<16x256xf32> to vector<16x16xf32>
    %78 = vector.extract_strided_slice %36 {offsets = [0, 240], sizes = [16, 16], strides = [1, 1]} : vector<16x256xf32> to vector<16x16xf32>
    %79 = vector.shape_cast %71 : vector<16x16xf32> to vector<1x16x16xf32>
    %80 = vector.shape_cast %72 : vector<16x16xf32> to vector<1x16x16xf32>
    %81 = vector.shape_cast %73 : vector<16x16xf32> to vector<1x16x16xf32>
    %82 = vector.shape_cast %74 : vector<16x16xf32> to vector<1x16x16xf32>
    %83 = vector.shape_cast %75 : vector<16x16xf32> to vector<1x16x16xf32>
    %84 = vector.shape_cast %76 : vector<16x16xf32> to vector<1x16x16xf32>
    %85 = vector.shape_cast %77 : vector<16x16xf32> to vector<1x16x16xf32>
    %86 = vector.shape_cast %78 : vector<16x16xf32> to vector<1x16x16xf32>
    %87 = tpu.concatenate %79, %80, %81, %82, %83, %84, %85, %86 in 0 : vector<1x16x16xf32>, vector<1x16x16xf32>, vector<1x16x16xf32>, vector<1x16x16xf32>, vector<1x16x16xf32>, vector<1x16x16xf32>, vector<1x16x16xf32>, vector<1x16x16xf32> -> vector<8x16x16xf32>
    %88 = vector.shape_cast %53 : vector<8x8x16xf32> to vector<16x4x16xf32>
    %89 = vector.shape_cast %70 : vector<8x16x16xf32> to vector<16x8x16xf32>
    %90 = vector.shape_cast %87 : vector<8x16x16xf32> to vector<16x8x16xf32>
    "tpu.trace_start"() <{level = 10 : i32, message = "gqd,gsd->gqs"}> : () -> ()
    %cst_22 = arith.constant dense<0.000000e+00> : vector<16x4x8xf32>
    %91 = tpu.matmul %88, %89, %cst_22 {dimension_numbers = #tpu.dot_dimension_numbers<[2], [2], [1], [1], [0, 0, 0, 1, 1, 1], [0], [0]>} : vector<16x4x16xf32>, vector<16x8x16xf32>, vector<16x4x8xf32> -> vector<16x4x8xf32>
    "tpu.trace_stop"() : () -> ()
    %cst_23 = arith.constant 2.500000e-01 : f32
    %92 = vector.broadcast %cst_23 : f32 to vector<16x4x8xf32>
    %93 = arith.mulf %92, %91 : vector<16x4x8xf32>
    %cst_24 = arith.constant dense<0xFF800000> : vector<16x4xf32>
    %94 = vector.multi_reduction <maximumf>, %93, %cst_24 [2] : vector<16x4x8xf32> to vector<16x4xf32>
    %95 = vector.shape_cast %94 : vector<16x4xf32> to vector<16x4x1xf32>
    %96 = vector.broadcast %95 : vector<16x4x1xf32> to vector<16x4x8xf32>
    %97 = arith.subf %93, %96 : vector<16x4x8xf32>
    %98 = math.exp %97 : vector<16x4x8xf32>
    %cst_25 = arith.constant dense<0.000000e+00> : vector<16x4xf32>
    %99 = vector.multi_reduction <add>, %98, %cst_25 [2] : vector<16x4x8xf32> to vector<16x4xf32>
    %100 = vector.shape_cast %99 : vector<16x4xf32> to vector<16x4x1xf32>
    %101 = vector.broadcast %100 : vector<16x4x1xf32> to vector<16x4x8xf32>
    %102 = arith.divf %98, %101 : vector<16x4x8xf32>
    "tpu.trace_start"() <{level = 10 : i32, message = "gqs,gsd->gqd"}> : () -> ()
    %cst_26 = arith.constant dense<0.000000e+00> : vector<16x4x16xf32>
    %103 = tpu.matmul %102, %90, %cst_26 {dimension_numbers = #tpu.dot_dimension_numbers<[2], [1], [1], [2], [0, 0, 0, 1, 1, 2], [0], [0]>} : vector<16x4x8xf32>, vector<16x8x16xf32>, vector<16x4x16xf32> -> vector<16x4x16xf32>
    "tpu.trace_stop"() : () -> ()
    %104 = vector.shape_cast %103 : vector<16x4x16xf32> to vector<8x8x16xf32>
    %105 = vector.extract_strided_slice %104 {offsets = [0, 0, 0], sizes = [1, 8, 16], strides = [1, 1, 1]} : vector<8x8x16xf32> to vector<1x8x16xf32>
    %106 = vector.shape_cast %105 : vector<1x8x16xf32> to vector<8x16xf32>
    %107 = vector.extract_strided_slice %104 {offsets = [1, 0, 0], sizes = [1, 8, 16], strides = [1, 1, 1]} : vector<8x8x16xf32> to vector<1x8x16xf32>
    %108 = vector.shape_cast %107 : vector<1x8x16xf32> to vector<8x16xf32>
    %109 = vector.extract_strided_slice %104 {offsets = [2, 0, 0], sizes = [1, 8, 16], strides = [1, 1, 1]} : vector<8x8x16xf32> to vector<1x8x16xf32>
    %110 = vector.shape_cast %109 : vector<1x8x16xf32> to vector<8x16xf32>
    %111 = vector.extract_strided_slice %104 {offsets = [3, 0, 0], sizes = [1, 8, 16], strides = [1, 1, 1]} : vector<8x8x16xf32> to vector<1x8x16xf32>
    %112 = vector.shape_cast %111 : vector<1x8x16xf32> to vector<8x16xf32>
    %113 = vector.extract_strided_slice %104 {offsets = [4, 0, 0], sizes = [1, 8, 16], strides = [1, 1, 1]} : vector<8x8x16xf32> to vector<1x8x16xf32>
    %114 = vector.shape_cast %113 : vector<1x8x16xf32> to vector<8x16xf32>
    %115 = vector.extract_strided_slice %104 {offsets = [5, 0, 0], sizes = [1, 8, 16], strides = [1, 1, 1]} : vector<8x8x16xf32> to vector<1x8x16xf32>
    %116 = vector.shape_cast %115 : vector<1x8x16xf32> to vector<8x16xf32>
    %117 = vector.extract_strided_slice %104 {offsets = [6, 0, 0], sizes = [1, 8, 16], strides = [1, 1, 1]} : vector<8x8x16xf32> to vector<1x8x16xf32>
    %118 = vector.shape_cast %117 : vector<1x8x16xf32> to vector<8x16xf32>
    %119 = vector.extract_strided_slice %104 {offsets = [7, 0, 0], sizes = [1, 8, 16], strides = [1, 1, 1]} : vector<8x8x16xf32> to vector<1x8x16xf32>
    %120 = vector.shape_cast %119 : vector<1x8x16xf32> to vector<8x16xf32>
    %121 = tpu.concatenate %106, %108, %110, %112, %114, %116, %118, %120 in 1 : vector<8x16xf32>, vector<8x16xf32>, vector<8x16xf32>, vector<8x16xf32>, vector<8x16xf32>, vector<8x16xf32>, vector<8x16xf32>, vector<8x16xf32> -> vector<8x128xf32>
    %c0_27 = arith.constant 0 : index
    %c0_28 = arith.constant 0 : index
    %c0_29 = arith.constant 0 : index
    %122 = vector.load %arg7[%c0_27, %c0_28, %c0_29] : memref<1x128x128xf32, #tpu.memory_space<vmem>>, vector<1x128x128xf32>
    %123 = vector.shape_cast %122 : vector<1x128x128xf32> to vector<128x128xf32>
    %cst_30 = arith.constant dense<0.000000e+00> : vector<8x128xf32>
    %124 = tpu.matmul %121, %123, %cst_30 {dimension_numbers = #tpu.dot_dimension_numbers<[1], [0], [0], [1], [0, 0, 1, 1], [], []>} : vector<8x128xf32>, vector<128x128xf32>, vector<8x128xf32> -> vector<8x128xf32>
    %125 = arith.addf %124, %3 : vector<8x128xf32>
    %cst_31 = arith.constant dense<0.000000e+00> : vector<8xf32>
    %126 = vector.multi_reduction <add>, %125, %cst_31 [1] : vector<8x128xf32> to vector<8xf32>
    %127 = vector.shape_cast %126 : vector<8xf32> to vector<8x1xf32>
    %cst_32 = arith.constant 1.280000e+02 : f32
    %128 = vector.broadcast %cst_32 : f32 to vector<8x1xf32>
    %129 = arith.divf %127, %128 : vector<8x1xf32>
    %130 = vector.broadcast %129 : vector<8x1xf32> to vector<8x128xf32>
    %131 = arith.subf %125, %130 : vector<8x128xf32>
    %132 = arith.mulf %131, %131 : vector<8x128xf32>
    %cst_33 = arith.constant dense<0.000000e+00> : vector<8xf32>
    %133 = vector.multi_reduction <add>, %132, %cst_33 [1] : vector<8x128xf32> to vector<8xf32>
    %134 = vector.shape_cast %133 : vector<8xf32> to vector<8x1xf32>
    %cst_34 = arith.constant 1.280000e+02 : f32
    %135 = vector.broadcast %cst_34 : f32 to vector<8x1xf32>
    %136 = arith.divf %134, %135 : vector<8x1xf32>
    %137 = vector.broadcast %129 : vector<8x1xf32> to vector<8x128xf32>
    %138 = arith.subf %125, %137 : vector<8x128xf32>
    %cst_35 = arith.constant 9.99999974E-6 : f32
    %139 = vector.broadcast %cst_35 : f32 to vector<8x1xf32>
    %140 = arith.addf %136, %139 : vector<8x1xf32>
    %141 = math.rsqrt %140 : vector<8x1xf32>
    %142 = vector.broadcast %141 : vector<8x1xf32> to vector<8x128xf32>
    %143 = arith.mulf %138, %142 : vector<8x128xf32>
    %c0_36 = arith.constant 0 : index
    %c0_37 = arith.constant 0 : index
    %c0_38 = arith.constant 0 : index
    %144 = vector.load %arg8[%c0_36, %c0_37, %c0_38] : memref<1x128x512xf32, #tpu.memory_space<vmem>>, vector<1x128x512xf32>
    %145 = vector.shape_cast %144 : vector<1x128x512xf32> to vector<128x512xf32>
    %cst_39 = arith.constant dense<0.000000e+00> : vector<8x512xf32>
    %146 = tpu.matmul %143, %145, %cst_39 {dimension_numbers = #tpu.dot_dimension_numbers<[1], [0], [0], [1], [0, 0, 1, 1], [], []>} : vector<8x128xf32>, vector<128x512xf32>, vector<8x512xf32> -> vector<8x512xf32>
    %c0_40 = arith.constant 0 : index
    %c0_41 = arith.constant 0 : index
    %c0_42 = arith.constant 0 : index
    %147 = vector.load %arg9[%c0_40, %c0_41, %c0_42] : memref<1x1x512xf32, #tpu.memory_space<vmem>>, vector<1x1x512xf32>
    %148 = vector.shape_cast %147 : vector<1x1x512xf32> to vector<1x512xf32>
    %149 = vector.broadcast %148 : vector<1x512xf32> to vector<8x512xf32>
    %150 = arith.addf %146, %149 : vector<8x512xf32>
    %cst_43 = arith.constant 0.000000e+00 : f32
    %151 = vector.broadcast %cst_43 : f32 to vector<8x512xf32>
    %152 = arith.maximumf %150, %151 : vector<8x512xf32>
    %c0_44 = arith.constant 0 : index
    %c0_45 = arith.constant 0 : index
    %c0_46 = arith.constant 0 : index
    %153 = vector.load %arg10[%c0_44, %c0_45, %c0_46] : memref<1x512x128xf32, #tpu.memory_space<vmem>>, vector<1x512x128xf32>
    %154 = vector.shape_cast %153 : vector<1x512x128xf32> to vector<512x128xf32>
    %cst_47 = arith.constant dense<0.000000e+00> : vector<8x128xf32>
    %155 = tpu.matmul %152, %154, %cst_47 {dimension_numbers = #tpu.dot_dimension_numbers<[1], [0], [0], [1], [0, 0, 1, 1], [], []>} : vector<8x512xf32>, vector<512x128xf32>, vector<8x128xf32> -> vector<8x128xf32>
    %c0_48 = arith.constant 0 : index
    %c0_49 = arith.constant 0 : index
    %c0_50 = arith.constant 0 : index
    %156 = vector.load %arg11[%c0_48, %c0_49, %c0_50] : memref<1x1x128xf32, #tpu.memory_space<vmem>>, vector<1x1x128xf32>
    %157 = vector.shape_cast %156 : vector<1x1x128xf32> to vector<1x128xf32>
    %158 = vector.broadcast %157 : vector<1x128xf32> to vector<8x128xf32>
    %159 = arith.addf %155, %158 : vector<8x128xf32>
    %160 = arith.addf %159, %125 : vector<8x128xf32>
    %c0_51 = arith.constant 0 : index
    %c0_52 = arith.constant 0 : index
    %161 = vector.load %arg13[%c0_51, %c0_52] : memref<8x128xf32, #tpu.memory_space<vmem>>, vector<8x128xf32>
    tpu.vector_store %arg13[%c0_51, %c0_52], %160 {strides = array<i32>} : memref<8x128xf32, #tpu.memory_space<vmem>>, vector<8x128xf32>,
    %c0_53 = arith.constant 0 : index
    %c0_54 = arith.constant 0 : index
    %162 = vector.load %arg12[%c0_53, %c0_54] : memref<8x128xf32, #tpu.memory_space<vmem>>, vector<8x128xf32>
    tpu.vector_store %arg12[%c0_53, %c0_54], %160 {strides = array<i32>} : memref<8x128xf32, #tpu.memory_space<vmem>>, vector<8x128xf32>,
    return
  }
  func.func @transform_0(%arg0: i32) -> (i32, i32) {
    %c0_i32 = arith.constant 0 : i32
    %c0_i32_0 = arith.constant 0 : i32
    %c0_i32_1 = arith.constant 0 : i32
    return %c0_i32, %c0_i32_0 : i32, i32
  }
  func.func @transform_1(%arg0: i32) -> (i32, i32) {
    %c0_i32 = arith.constant 0 : i32
    %c0_i32_0 = arith.constant 0 : i32
    %c0_i32_1 = arith.constant 0 : i32
    return %c0_i32, %c0_i32_0 : i32, i32
  }
  func.func @transform_2(%arg0: i32) -> (i32, i32, i32) {
    %c0_i32 = arith.constant 0 : i32
    %c0_i32_0 = arith.constant 0 : i32
    %c0_i32_1 = arith.constant 0 : i32
    return %arg0, %c0_i32, %c0_i32_0 : i32, i32, i32
  }
  func.func @transform_3(%arg0: i32) -> (i32, i32, i32) {
    %c0_i32 = arith.constant 0 : i32
    %c0_i32_0 = arith.constant 0 : i32
    %c0_i32_1 = arith.constant 0 : i32
    return %arg0, %c0_i32, %c0_i32_0 : i32, i32, i32
  }
  func.func @transform_4(%arg0: i32) -> (i32, i32, i32) {
    %c0_i32 = arith.constant 0 : i32
    %c0_i32_0 = arith.constant 0 : i32
    %c0_i32_1 = arith.constant 0 : i32
    return %arg0, %c0_i32, %c0_i32_0 : i32, i32, i32
  }
  func.func @transform_5(%arg0: i32) -> (i32, i32, i32) {
    %c0_i32 = arith.constant 0 : i32
    %c0_i32_0 = arith.constant 0 : i32
    %c0_i32_1 = arith.constant 0 : i32
    return %arg0, %c0_i32, %c0_i32_0 : i32, i32, i32
  }
  func.func @transform_6(%arg0: i32) -> (i32, i32, i32) {
    %c0_i32 = arith.constant 0 : i32
    %c0_i32_0 = arith.constant 0 : i32
    %c0_i32_1 = arith.constant 0 : i32
    return %arg0, %c0_i32, %c0_i32_0 : i32, i32, i32
  }
  func.func @transform_7(%arg0: i32) -> (i32, i32, i32) {
    %c0_i32 = arith.constant 0 : i32
    %c0_i32_0 = arith.constant 0 : i32
    %c0_i32_1 = arith.constant 0 : i32
    return %arg0, %c0_i32, %c0_i32_0 : i32, i32, i32
  }
  func.func @transform_8(%arg0: i32) -> (i32, i32, i32) {
    %c0_i32 = arith.constant 0 : i32
    %c0_i32_0 = arith.constant 0 : i32
    %c0_i32_1 = arith.constant 0 : i32
    return %arg0, %c0_i32, %c0_i32_0 : i32, i32, i32
  }
  func.func @transform_9(%arg0: i32) -> (i32, i32, i32) {
    %c0_i32 = arith.constant 0 : i32
    %c0_i32_0 = arith.constant 0 : i32
    %c0_i32_1 = arith.constant 0 : i32
    return %arg0, %c0_i32, %c0_i32_0 : i32, i32, i32
  }
  func.func @transform_10(%arg0: i32) -> (i32, i32, i32) {
    %c0_i32 = arith.constant 0 : i32
    %c0_i32_0 = arith.constant 0 : i32
    %c0_i32_1 = arith.constant 0 : i32
    return %arg0, %c0_i32, %c0_i32_0 : i32, i32, i32
  }
  func.func @transform_11(%arg0: i32) -> (i32, i32) {
    %c0_i32 = arith.constant 0 : i32
    %c0_i32_0 = arith.constant 0 : i32
    %c0_i32_1 = arith.constant 0 : i32
    return %c0_i32, %c0_i32_0 : i32, i32
  }
}

</mosaic_0001>

<bundles_post_ra>
// kernel: tpu_custom_call.1
= control target key start
LH: loop header
LB: loop body
LE: loop exit
PB: predicated region body
PF: predicated region fallthrough
CT: control target
= control target key end

     0   :  { %s6610_s0 = inlined_call_operand.hbm [shape: f32[8,128], index: 0, kind: input, shape index: {}]   ;;  %s6611_s1 = inlined_call_operand.hbm [shape: f32[16,128], index: 1, kind: input, shape index: {}]   ;;  %s6612_s2 = inlined_call_operand.hbm [shape: f32[2,128,128], index: 2, kind: input, shape index: {}]   ;;  %s6613_s3 = inlined_call_operand.vmem [shape: f32[2,1,128], index: 3, kind: input, shape index: {}]   ;;  %s6614_s4 = inlined_call_operand.hbm [shape: f32[2,128,256], index: 4, kind: input, shape index: {}]   ;;  %s6615_s5 = inlined_call_operand.vmem [shape: f32[2,1,256], index: 5, kind: input, shape index: {}]   ;;  %s6616_s6 = inlined_call_operand.hbm [shape: f32[2,128,128], index: 6, kind: input, shape index: {}]   ;;  %s6617_s7 = inlined_call_operand.hbm [shape: f32[2,128,512], index: 7, kind: input, shape index: {}]   ;;  %s6618_s8 = inlined_call_operand.vmem [shape: f32[2,1,512], index: 8, kind: input, shape index: {}]   ;;  %s6619_s9 = inlined_call_operand.hbm [shape: f32[2,512,128], index: 9, kind: input, shape index: {}]   ;;  %s6620_s10 = inlined_call_operand.vmem [shape: f32[2,1,128], index: 10, kind: input, shape index: {}]   ;;  %s6621_s11 = inlined_call_operand.hbm [shape: f32[8,128], index: 11, kind: output, shape index: {}]  }
   0x1   :  { %6645 = sst [smem:[#allocation23_spill]] %s6610_s0 }
   0x2   :  { %6646 = sst [smem:[#allocation24_spill]] %s6612_s2 }
   0x3   :  { %6647 = sst [smem:[#allocation25_spill]] %s6613_s3 }
   0x4   :  { %6648 = sst [smem:[#allocation26_spill]] %s6614_s4 }
   0x5   :  { %6649 = sst [smem:[#allocation27_spill]] %s6615_s5 }
   0x6   :  { %6650 = sst [smem:[#allocation28_spill]] %s6616_s6 }
   0x7   :  { %6651 = sst [smem:[#allocation29_spill]] %s6617_s7 }
   0x8   :  { %6652 = sst [smem:[#allocation30_spill]] %s6618_s8 }
   0x9   :  { %6653 = sst [smem:[#allocation31_spill]] %s6620_s10 }
   0xa   :  { %6654 = sst [smem:[#allocation32_spill]] %s6621_s11 }
   0xb   :  { %16 = vsyncpa [#allocation5], 0 }
   0xc   :  { %17 = vsyncpa [#allocation8], 0 }
   0xd   :  { %18 = vsyncpa [#allocation6], 0  ;;  %s5570_s17 = smov 0   ;;  %s5572_s18 = smov 0  }
   0xe   :  { %s5574_s19 = smov 0   ;;  %s5576_s20 = smov 0  }
   0xf LB: > { %6655 = sst [smem:[#allocation19_spill]] %s5480_s19  ;;  %s5589_s21 = sadd.s32 4294967295, %s5484_s20   ;;  %s5484_s20 = sphi %s5576_s20, %s6696_s20   ;;  %s5480_s19 = sphi %s5574_s19, %s6698_s19   ;;  %s5476_s18 = sphi %s5572_s18, %s6700_s18   ;;  %s5472_s17 = sphi %s5570_s17, %s6699_s17  }
  0x10   : > { %s5592_s22 = sadd.s32 1, %s5484_s20   ;;  %s73_s24 = sadd.s32 1, %s5480_s19 }
  0x11   : > { %6656 = sst [smem:[#allocation20_spill]] %s5592_s22  ;;  %s70_s23 = ssub.s32 %s5484_s20, %s5592_s22 }
  0x12   : > { %p71_p0 = scmp.eq.s32.totalorder %s70_s23, 0  ;;  %p80_p1 = scmp.ne.s32.totalorder %s5480_s19, %s5476_s18 }
  0x13   : > { %p81_p2 = scmp.eq.s32.totalorder %s5484_s20, 0  ;;  %p86_p3 = scmp.ne.s32.totalorder %s5476_s18, %s5472_s17 }
  0x14   : > { %s5602_s25 = scalar_select %p71_p0, %s5480_s19, %s73_s24  }
  0x15   : > { %p5604_p4 = por %p81_p2, %p80_p1  ;;  %p6622_p5 = scmp.eq.s32.totalorder %s5589_s21, 0 }
  0x16   : > { %6657 = sst [smem:[#allocation21_spill]] %s5602_s25  ;;  %p4335_p6 = scmp.ge.s32.totalorder %s5484_s20, 1 }
  0x17   : > { %p326_p7 = scmp.lt.s32.totalorder %s5484_s20, 3  ;;  %p5613_p8 = por %p6622_p5, %p86_p3 }
  0x18   : > { %s5486_s29 = smov [#allocation4]   ;;  %p5077_p12 = scmp.lt.s32.totalorder %s5484_s20, 2 }
  0x19   : > { %s6659_s27 = scalar_select %p5613_p8, 1, 0 }
  0x1a   : > { %p5618_p10 = pnand %p4335_p6, %p326_p7  ;;  %s339_s30 = sshll.u32 %s5486_s29, 4  ;;  %s340_s30 = int_to_ptr.vmem [resolvable:$true] %s339_s30 }
  0x1b   : > { %6660 = sst [smem:[#allocation22_spill]] %s6659_s27  ;;  %p5633_p0 = pnand %p5077_p12, %p5604_p4 }
  0x1c   : > { %s6661_s28 = scalar_select %p5618_p10, 1, 0 }
  0x1d   : > { %p5052_p11 = pneg %p5618_p10  ;;  %s363_s14 = sand.u32 1, %s5484_s20  }
  0x1e   : > { %s6663_s13 = scalar_select %p5633_p0, 1, 0 }
  0x1f   : > { %p5627_p13 = pnand %p5052_p11, %p6622_p5  ;;  %s6664_s0 = sld [smem:[#allocation23_spill]] }
  0x21   : > { %s6662_s12 = scalar_select %p5627_p13, 1, 0 }
  0x22   : > { %p6631_p2 = pneg %p5627_p13 }
  0x25   : > { %s5206_s17 = scalar_lea.hbm %s6664_s0, 128 }
  0x26   : > { %p5207_p1 = scmp.ne.s32.totalorder %s6664_s0, %s5206_s17  ;;  %p5213_p4 = scmp.lt.u32.totalorder %s5206_s17, %s6664_s0 }
  0x28   : > { %p5209_p3 = pnand %p6631_p2, %p5207_p1 }
  0x2a   : > { %p5210_p6 = pneg %p5209_p3 }
  0x2c   : > { %p5215_p7 = pnand %p5213_p4, %p5210_p6 }
  0x2e   : > { %5218 = shalt.err (!%p5215_p7)
}
  0x2f   : > { %s5219_s25 = scalar_lea.vmem %s340_s30, 128  ;;  %p5227_p5 = scmp.lt.s32.totalorder %s340_s30, %s340_s30 }
  0x30   : > { %p5220_p11 = scmp.ne.s32.totalorder %s340_s30, %s5219_s25  ;;  %p5228_p8 = scmp.lt.s32.totalorder %s5219_s25, %s5219_s25 }
  0x32   : > { %p5222_p12 = pnand %p5220_p11, %p6631_p2  ;;  %p5229_p10 = por %p5228_p8, %p5227_p5 }
  0x34   : > { %p5223_p9 = pneg %p5222_p12 }
  0x36   : > { %p5230_p0 = pnand %p5229_p10, %p5223_p9 }
  0x38   : > { %5233 = shalt.err (!%p5230_p0)
}
  0x39   : > { %5055 = dma.hbm_to_vmem [thread:$0]  (!%p5627_p13), %s6664_s0, 128, %s340_s30, [#allocation5]  }
  0x3a   : > { %s5661_s17 = sand.u32 1, %s5480_s19   ;;  %s6630_s25 = sshll.u32 %s5484_s20, 11 }
  0x3b   : > { %s6629_s23 = sshll.u32 %s5661_s17, 7  ;;  %s6665_s2 = sld [smem:[#allocation24_spill]] }
  0x3c   : > { %s367_s15 = scalar_lea.vmem [#allocation9], %s6629_s23  ;;  %s4342_s16 = sshll.u32 %s5661_s17, 8 }
  0x3d   : > { %s374_s30 = sshll.u32 %s367_s15, 4  ;;  %s5677_s0 = scalar_lea.sflag [#allocation5], %s363_s14  ;;  %s5675_s30 = int_to_ptr.vmem [resolvable:$true] %s374_s30 }
  0x3e   : > { %p6666_p8 = scmp.ne.s32.totalorder %s6663_s13, 0 }
  0x40   : > { %p5683_p9 = pneg %p6666_p8 }
  0x41   : > { %s5670_s29 = scalar_lea.hbm %s6665_s2, %s6630_s25  ;;  %s5239_s15 = scalar_lea.hbm %s6665_s2, 4096 }
  0x42   : > { %s5234_s19 = scalar_lea.hbm %s5670_s29, 2048  ;;  %p5240_p1 = scmp.lt.u32.totalorder %s5670_s29, %s6665_s2 }
  0x43   : > { %p5235_p5 = scmp.ne.s32.totalorder %s5670_s29, %s5234_s19  ;;  %p5241_p3 = scmp.lt.u32.totalorder %s5239_s15, %s5234_s19 }
  0x44   : > { %s6667_s22 = scalar_select %p5683_p9, 1, 0 }
  0x45   : > { %p5237_p10 = pnand %p5683_p9, %p5235_p5  ;;  %p5242_p6 = por %p5241_p3, %p5240_p1 }
  0x46   : > { %p5243_p4 = scmp.lt.u32.totalorder %s5234_s19, %s5670_s29 }
  0x47   : > { %p5238_p0 = pneg %p5237_p10 }
  0x48   : > { %p5244_p7 = por %p5243_p4, %p5242_p6 }
  0x4a   : > { %p5245_p11 = pnand %p5244_p7, %p5238_p0 }
  0x4c   : > { %5248 = shalt.err (!%p5245_p11)
}
  0x4d   : > { %s5249_s14 = scalar_lea.vmem %s5675_s30, 2048  ;;  %s5487_s24 = smov [#allocation9]  }
  0x4e   : > { %p5250_p12 = scmp.ne.s32.totalorder %s5675_s30, %s5249_s14  ;;  %s5254_s26 = sshll.u32 %s5487_s24, 4  ;;  %s5255_s26 = int_to_ptr.vmem [resolvable:$false] %s5254_s26 }
  0x4f   : > { %s5256_s23 = scalar_lea.vmem %s5255_s26, 4096  ;;  %p5257_p2 = scmp.lt.s32.totalorder %s5675_s30, %s5255_s26 }
  0x50   : > { %p5252_p5 = pnand %p5250_p12, %p5683_p9  ;;  %p5258_p13 = scmp.lt.s32.totalorder %s5256_s23, %s5249_s14 }
  0x52   : > { %p5253_p10 = pneg %p5252_p5  ;;  %p5259_p1 = por %p5258_p13, %p5257_p2 }
  0x54   : > { %p5260_p3 = pnand %p5259_p1, %p5253_p10 }
  0x56   : > { %5263 = shalt.err (!%p5260_p3)
}
  0x57   : > { %s6635_s19 = smov 128   ;;  %s6637_s25 = smov 8  }
  0x58   : > { %5062 = dma.hbm_to_vmem [thread:$0]  (!%p6666_p8), %s5670_s29, 2048, %s5675_s30, %s5677_s0, %s6635_s19, %s6635_s19, %s6637_s25  }
  0x59   : > { %s4420_s15 = sshll.u32 %s5484_s20, 12  ;;  %s394_s14 = scalar_lea.vmem [#allocation10], %s4342_s16 }
  0x5a   : > { %s401_s24 = sshll.u32 %s394_s14, 4  ;;  %s6668_s4 = sld [smem:[#allocation26_spill]]  ;;  %s5718_s24 = int_to_ptr.vmem [resolvable:$true] %s401_s24 }
  0x60   : > { %s5716_s2 = scalar_lea.hbm %s6668_s4, %s4420_s15  ;;  %s5269_s16 = scalar_lea.hbm %s6668_s4, 8192 }
  0x61   : > { %s5264_s11 = scalar_lea.hbm %s5716_s2, 4096  ;;  %p5270_p6 = scmp.lt.u32.totalorder %s5716_s2, %s6668_s4 }
  0x62   : > { %p5265_p13 = scmp.ne.s32.totalorder %s5716_s2, %s5264_s11  ;;  %p5271_p4 = scmp.lt.u32.totalorder %s5269_s16, %s5264_s11 }
  0x63   : > { %p5273_p11 = scmp.lt.u32.totalorder %s5264_s11, %s5716_s2 }
  0x64   : > { %p5267_p2 = pnand %p5265_p13, %p5683_p9  ;;  %p5272_p7 = por %p5271_p4, %p5270_p6 }
  0x66   : > { %p5268_p0 = pneg %p5267_p2  ;;  %p5274_p12 = por %p5273_p11, %p5272_p7 }
  0x68   : > { %p5275_p5 = pnand %p5274_p12, %p5268_p0 }
  0x6a   : > { %5278 = shalt.err (!%p5275_p5)
}
  0x6b   : > { %s5279_s15 = scalar_lea.vmem %s5718_s24, 4096  ;;  %s5490_s26 = smov [#allocation10]  }
  0x6c   : > { %p5280_p10 = scmp.ne.s32.totalorder %s5718_s24, %s5279_s15  ;;  %s5284_s23 = sshll.u32 %s5490_s26, 4  ;;  %s5285_s23 = int_to_ptr.vmem [resolvable:$false] %s5284_s23 }
  0x6d   : > { %s5286_s19 = scalar_lea.vmem %s5285_s23, 8192  ;;  %p5287_p13 = scmp.lt.s32.totalorder %s5718_s24, %s5285_s23 }
  0x6e   : > { %p5282_p1 = pnand %p5280_p10, %p5683_p9  ;;  %p5288_p2 = scmp.lt.s32.totalorder %s5286_s19, %s5279_s15 }
  0x70   : > { %p5283_p3 = pneg %p5282_p1  ;;  %p5289_p6 = por %p5288_p2, %p5287_p13 }
  0x72   : > { %p5290_p4 = pnand %p5289_p6, %p5283_p3 }
  0x74   : > { %5293 = shalt.err (!%p5290_p4)
}
  0x75   : > { %s5491_s11 = smov 256   ;;  %s5492_s29 = smov 16  }
  0x76   : > { %5065 = dma.hbm_to_vmem [thread:$0]  (!%p6666_p8), %s5716_s2, 4096, %s5718_s24, %s5677_s0, %s5491_s11, %s5491_s11, %s5492_s29  }
  0x77   : > { %s6669_s30 = sshll.u32 %s5484_s20, 11  ;;  %s6670_s6 = sld [smem:[#allocation28_spill]] }
  0x78   : > { %s6671_s26 = sshll.u32 %s5661_s17, 7  ;;  %s6639_s25 = sshll.u32 %s5661_s17, 9 }
  0x79   : > { %s422_s23 = scalar_lea.vmem [#allocation11], %s6671_s26 }
  0x7a   : > { %s429_s19 = sshll.u32 %s422_s23, 4  ;;  %s5752_s19 = int_to_ptr.vmem [resolvable:$true] %s429_s19 }
  0x7d   : > { %s5747_s15 = scalar_lea.hbm %s6670_s6, %s6669_s30  ;;  %s5299_s11 = scalar_lea.hbm %s6670_s6, 4096 }
  0x7e   : > { %s5294_s4 = scalar_lea.hbm %s5747_s15, 2048  ;;  %p5300_p12 = scmp.lt.u32.totalorder %s5747_s15, %s6670_s6 }
  0x7f   : > { %p5295_p0 = scmp.ne.s32.totalorder %s5747_s15, %s5294_s4  ;;  %p5301_p5 = scmp.lt.u32.totalorder %s5299_s11, %s5294_s4 }
  0x80   : > { %p5303_p1 = scmp.lt.u32.totalorder %s5294_s4, %s5747_s15 }
  0x81   : > { %p5297_p7 = pnand %p5295_p0, %p5683_p9  ;;  %p5302_p10 = por %p5301_p5, %p5300_p12 }
  0x83   : > { %p5298_p11 = pneg %p5297_p7  ;;  %p5304_p3 = por %p5303_p1, %p5302_p10 }
  0x85   : > { %p5305_p13 = pnand %p5304_p3, %p5298_p11 }
  0x87   : > { %5308 = shalt.err (!%p5305_p13)
}
  0x88   : > { %s5309_s16 = scalar_lea.vmem %s5752_s19, 2048  ;;  %s5493_s14 = smov [#allocation11]  }
  0x89   : > { %p5310_p2 = scmp.ne.s32.totalorder %s5752_s19, %s5309_s16  ;;  %s5314_s26 = sshll.u32 %s5493_s14, 4  ;;  %s5315_s26 = int_to_ptr.vmem [resolvable:$false] %s5314_s26 }
  0x8a   : > { %s5316_s23 = scalar_lea.vmem %s5315_s26, 4096  ;;  %p5317_p0 = scmp.lt.s32.totalorder %s5752_s19, %s5315_s26 }
  0x8b   : > { %p5312_p6 = pnand %p5310_p2, %p5683_p9  ;;  %p5318_p7 = scmp.lt.s32.totalorder %s5316_s23, %s5309_s16 }
  0x8d   : > { %p5313_p4 = pneg %p5312_p6  ;;  %p5319_p12 = por %p5318_p7, %p5317_p0 }
  0x8f   : > { %p5320_p5 = pnand %p5319_p12, %p5313_p4 }
  0x91   : > { %5323 = shalt.err (!%p5320_p5)
}
  0x92   : > { %s6672_s4 = smov 8   ;;  %s6673_s2 = smov 128  }
  0x93   : > { %5068 = dma.hbm_to_vmem [thread:$0]  (!%p6666_p8), %s5747_s15, 2048, %s5752_s19, %s5677_s0, %s6673_s2, %s6673_s2, %s6672_s4  }
  0x94   : > { %s4422_s24 = sshll.u32 %s5484_s20, 13  ;;  %s443_s11 = scalar_lea.vmem [#allocation12], %s6639_s25 }
  0x95   : > { %s450_s29 = sshll.u32 %s443_s11, 4  ;;  %s6674_s7 = sld [smem:[#allocation29_spill]]  ;;  %s5789_s29 = int_to_ptr.vmem [resolvable:$true] %s450_s29 }
  0x9b   : > { %s5787_s14 = scalar_lea.hbm %s6674_s7, %s4422_s24  ;;  %s5329_s23 = scalar_lea.hbm %s6674_s7, 16384 }
  0x9c   : > { %s5324_s26 = scalar_lea.hbm %s5787_s14, 8192  ;;  %p5330_p3 = scmp.lt.u32.totalorder %s5787_s14, %s6674_s7 }
  0x9d   : > { %p5325_p11 = scmp.ne.s32.totalorder %s5787_s14, %s5324_s26  ;;  %p5331_p13 = scmp.lt.u32.totalorder %s5329_s23, %s5324_s26 }
  0x9e   : > { %p5333_p6 = scmp.lt.u32.totalorder %s5324_s26, %s5787_s14 }
  0x9f   : > { %p5327_p10 = pnand %p5325_p11, %p5683_p9  ;;  %p5332_p2 = por %p5331_p13, %p5330_p3 }
  0xa1   : > { %p5328_p1 = pneg %p5327_p10  ;;  %p5334_p4 = por %p5333_p6, %p5332_p2 }
  0xa3   : > { %p5335_p0 = pnand %p5334_p4, %p5328_p1 }
  0xa5   : > { %5338 = shalt.err (!%p5335_p0)
}
  0xa6   : > { %s5339_s30 = scalar_lea.vmem %s5789_s29, 8192  ;;  %s5494_s16 = smov [#allocation12]  }
  0xa7   : > { %p5340_p7 = scmp.ne.s32.totalorder %s5789_s29, %s5339_s30  ;;  %s5344_s15 = sshll.u32 %s5494_s16, 4  ;;  %s5345_s15 = int_to_ptr.vmem [resolvable:$false] %s5344_s15 }
  0xa8   : > { %s5346_s25 = scalar_lea.vmem %s5345_s15, 16384  ;;  %p5347_p11 = scmp.lt.s32.totalorder %s5789_s29, %s5345_s15 }
  0xa9   : > { %p5342_p12 = pnand %p5340_p7, %p5683_p9  ;;  %p5348_p10 = scmp.lt.s32.totalorder %s5346_s25, %s5339_s30 }
  0xab   : > { %p5343_p5 = pneg %p5342_p12  ;;  %p5349_p3 = por %p5348_p10, %p5347_p11 }
  0xad   : > { %p5350_p13 = pnand %p5349_p3, %p5343_p5 }
  0xaf   : > { %5353 = shalt.err (!%p5350_p13)
}
  0xb0   : > { %s5495_s26 = smov 512   ;;  %s5496_s19 = smov 32  }
  0xb1   : > { %5071 = dma.hbm_to_vmem [thread:$0]  (!%p6666_p8), %s5787_s14, 8192, %s5789_s29, %s5677_s0, %s5495_s26, %s5495_s26, %s5496_s19  }
  0xb2   : > { %s5497_s23 = smov [#allocation7]   ;;  %s5818_s30 = scalar_lea.hbm %s6619_s9, %s4422_s24 }
  0xb3   : > { %s349_s11 = sshll.u32 %s5497_s23, 4  ;;  %s6675_s25 = sshll.u32 %s5661_s17, 9  ;;  %s350_s11 = int_to_ptr.vmem [resolvable:$true] %s349_s11 }
  0xb4   : > { %s471_s6 = scalar_lea.vmem [#allocation13], %s6675_s25  ;;  %s5354_s5 = scalar_lea.hbm %s6611_s1, 256 }
  0xb5   : > { %s478_s7 = sshll.u32 %s471_s6, 4  ;;  %p5355_p1 = scmp.ne.s32.totalorder %s6611_s1, %s5354_s5  ;;  %s5845_s7 = int_to_ptr.vmem [resolvable:$true] %s478_s7 }
  0xb6   : > { %p6676_p2 = scmp.ne.s32.totalorder %s6662_s12, 0  ;;  %p5361_p7 = scmp.lt.u32.totalorder %s5354_s5, %s6611_s1 }
  0xb8   : > { %p6677_p6 = pneg %p6676_p2 }
  0xba   : > { %p5357_p4 = pnand %p5355_p1, %p6677_p6 }
  0xbc   : > { %p5358_p0 = pneg %p5357_p4 }
  0xbe   : > { %p5363_p12 = pnand %p5361_p7, %p5358_p0 }
  0xc0   : > { %5366 = shalt.err (!%p5363_p12)
}
  0xc1   : > { %s5367_s17 = scalar_lea.vmem %s350_s11, 256  ;;  %p6678_p11 = pmov %p6677_p6 }
  0xc2   : > { %p5368_p5 = scmp.ne.s32.totalorder %s350_s11, %s5367_s17  ;;  %p5375_p13 = scmp.lt.s32.totalorder %s350_s11, %s350_s11 }
  0xc3   : > { %p5376_p8 = scmp.lt.s32.totalorder %s5367_s17, %s5367_s17 }
  0xc4   : > { %p5370_p10 = pnand %p5368_p5, %p6678_p11 }
  0xc5   : > { %p5377_p9 = por %p5376_p8, %p5375_p13 }
  0xc6   : > { %p5371_p3 = pneg %p5370_p10 }
  0xc8   : > { %p5378_p1 = pnand %p5377_p9, %p5371_p3 }
  0xca   : > { %5381 = shalt.err (!%p5378_p1)
}
  0xcb   : > { %5058 = dma.hbm_to_vmem [thread:$0]  (!%p6676_p2), %s6611_s1, 256, %s350_s11, [#allocation8], %s6673_s2, %s6673_s2, %s6672_s4  }
  0xcc   : > { %s5382_s6 = scalar_lea.hbm %s5818_s30, 8192  ;;  %p6679_p9 = scmp.ne.s32.totalorder %s6667_s22, 0 }
  0xcd   : > { %p5383_p8 = scmp.ne.s32.totalorder %s5818_s30, %s5382_s6  ;;  %s5387_s27 = scalar_lea.hbm %s6619_s9, 16384 }
  0xce   : > { %p5388_p0 = scmp.lt.u32.totalorder %s5818_s30, %s6619_s9  ;;  %p5389_p7 = scmp.lt.u32.totalorder %s5387_s27, %s5382_s6 }
  0xcf   : > { %p5385_p6 = pnand %p5383_p8, %p6679_p9  ;;  %p5391_p5 = scmp.lt.u32.totalorder %s5382_s6, %s5818_s30 }
  0xd0   : > { %p5390_p12 = por %p5389_p7, %p5388_p0 }
  0xd1   : > { %p5386_p4 = pneg %p5385_p6 }
  0xd2   : > { %p5392_p11 = por %p5391_p5, %p5390_p12 }
  0xd4   : > { %p5393_p2 = pnand %p5392_p11, %p5386_p4 }
  0xd6   : > { %5396 = shalt.err (!%p5393_p2)
}
  0xd7   : > { %s5397_s14 = scalar_lea.vmem %s5845_s7, 8192  ;;  %s5498_s26 = smov [#allocation13]  }
  0xd8   : > { %p5398_p10 = scmp.ne.s32.totalorder %s5845_s7, %s5397_s14  ;;  %s5402_s19 = sshll.u32 %s5498_s26, 4  ;;  %s5403_s19 = int_to_ptr.vmem [resolvable:$false] %s5402_s19 }
  0xd9   : > { %s5404_s23 = scalar_lea.vmem %s5403_s19, 16384  ;;  %p5405_p1 = scmp.lt.s32.totalorder %s5845_s7, %s5403_s19 }
  0xda   : > { %p5400_p3 = pnand %p5398_p10, %p6679_p9  ;;  %p5406_p8 = scmp.lt.s32.totalorder %s5404_s23, %s5397_s14 }
  0xdc   : > { %p5401_p13 = pneg %p5400_p3  ;;  %p5407_p6 = por %p5406_p8, %p5405_p1 }
  0xde   : > { %p5408_p0 = pnand %p5407_p6, %p5401_p13 }
  0xe0   : > { %5411 = shalt.err (!%p5408_p0)
}
  0xe1   : > { %p6680_p4 = scmp.ne.s32.totalorder %s6663_s13, 0  ;;  %p6681_p9 = scmp.ne.s32.totalorder %s6661_s28, 0 }
  0xe2   : > { %p6682_p7 = scmp.eq.s32.totalorder (!%p6681_p9), %s5589_s21, 0 }
  0xe3   : > { %5074 = dma.hbm_to_vmem [thread:$0]  (!%p6680_p4), %s5818_s30, 8192, %s5845_s7, %s5677_s0, %s6673_s2, %s6673_s2, %s6672_s4  }
  0xe4   : > { %496 = sbr.rel (%p6681_p9) target bundleno = 3132 (0xc3c), region = 64 }
  0xeb   : > { %5455 = dma.done.wait (%p6682_p7), [#allocation5], 128   ;;  %p6683_p12 = pmov %p6682_p7 }
  0xec   : > { %p6684_p5 = pmov %p6682_p7 }
  0xed   : > { %5457 = vsyncadd (%p6683_p12), [#allocation5], 4294967168 }
  0xee   : > { %5459 = dma.done.wait (%p6684_p5), [#allocation8], 256   ;;  %p6685_p11 = pmov %p6684_p5 }
  0xef   : > { %s6686_s22 = sld [smem:[#allocation22_spill]]  ;;  %s506_s13 = sand.u32 1, %s5589_s21  }
  0xf0   : > { %5461 = vsyncadd (%p6685_p11), [#allocation8], 4294967040  ;;  %s508_s0 = sand.u32 1, %s5476_s18   ;;  %s507_s28 = scalar_lea.sflag [#allocation5], %s506_s13 }
  0xf1   : > { %s4357_s7 = sshll.u32 %s508_s0, 7 }
  0xf2   : > { %s5884_s4 = scalar_lea.vmem [#allocation9], %s4357_s7 }
  0xf5   : > { %p6687_p2 = scmp.ne.s32.totalorder %s6686_s22, 0 }
  0xf7   : > { %5463 = dma.done.wait (%p6687_p2), %s507_s28, 24576  }
  0xf8   : > { %5465 = vsyncadd (%p6687_p2), %s507_s28, 4294942720  ;;  %s4358_s2 = sshll.u32 %s508_s0, 8  ;;  %s4360_s11 = sshll.u32 %s508_s0, 9 }
  0xf9   : > { %p614_p10 = scmp.lt.s32.totalorder %s5589_s21, 1  ;;  %s6688_s25 = sld [smem:[#allocation25_spill]] }
  0xfa   : > { %s6689_s5 = sld [smem:[#allocation27_spill]]  ;;  %s6690_s12 = sld [smem:[#allocation30_spill]] }
  0xfb   : > { %s5892_s16 = scalar_select %p614_p10, %s5589_s21, 1 }
  0xfc   : > { %s6691_s19 = sld [smem:[#allocation31_spill]]  ;;  %s5914_s22 = scalar_lea.vmem [#allocation10], %s4358_s2 }
  0xfd   : > { %s4362_s29 = sshll.u32 %s5892_s16, 1  ;;  %s4363_s8 = sshll.u32 %s5892_s16, 2 }
  0xfe   : > { %s5916_s13 = scalar_lea.vmem [#allocation11], %s4357_s7  ;;  %s5918_s0 = scalar_lea.vmem [#allocation12], %s4360_s11 }
  0xff   : > { %s616_s20 = scalar_lea.vmem %s6688_s25, %s5892_s16  ;;  %s5920_s28 = scalar_lea.vmem [#allocation13], %s4360_s11 }
 0x100   : > { %s5902_s6 = scalar_lea.vmem %s6689_s5, %s4362_s29  ;;  %s5908_s24 = scalar_lea.vmem %s6690_s12, %s4363_s8 }
 0x101   : > { %p6692_p3 = scmp.ne.s32.totalorder %s5589_s21, 0 }
 0x102   : > { %s627_s23 = scalar_lea.vmem %s6691_s19, %s5892_s16  ;;  %v634_v0 = vld [vmem:[#allocation7] sm:$0xff] (!%p6692_p3)  ;;  %v635_v1 = vld [vmem:[#allocation7 + $0x8] sm:$0xff] (!%p6692_p3)  ;;  %v632_v10 = vld [vmem:[#allocation4] sm:$0xff] (!%p6692_p3) }
 0x103   : > { %631 = sbr.rel (%p6692_p3) target bundleno = 571 (0x23b), region = 96  ;;  %636 = vadd.xlane.f32.xlu0 (!%p6692_p3), %v634_v0  ;;  %633 = vst [vmem:[#allocation2] sm:$0xff] (!%p6692_p3), %v632_v10 }
 0x107   : > { %638 = vadd.xlane.f32.xlu0 (!%p6692_p3), %v635_v1 }
 0x190   : > { %v637_v2 = vpop.xlane.xlu0 %636 }
 0x191   : > { %v641_v3 = vmul.f32 0.0078125, %v637_v2 }
 0x193   : > { %v643_v4 = vsub.f32 %v634_v0, %v641_v3 }
 0x194   : > { %v639_v5 = vpop.xlane.xlu0 %638 }
 0x195   : > { %v642_v6 = vmul.f32 0.0078125, %v639_v5  ;;  %v645_v7 = vmul.f32 %v643_v4, %v643_v4 }
 0x197   : > { %v644_v8 = vsub.f32 %v635_v1, %v642_v6  ;;  %647 = vadd.xlane.f32.xlu1 %v645_v7 }
 0x199   : > { %v646_v9 = vmul.f32 %v644_v8, %v644_v8 }
 0x19b   : > { %649 = vadd.xlane.f32.xlu1 %v646_v9 }
 0x224   : > { %v648_v11 = vpop.xlane.xlu1 %647 }
 0x225   : > { %v651_v12 = vmul.f32 0.0078125, %v648_v11 }
 0x227   : > { %v653_v13 = vadd.f32 1e-05, %v651_v12 }
 0x228   : > { %v650_v14 = vpop.xlane.xlu1 %649 }
 0x229   : > { %5133 = vrsqrt.f32 %v653_v13  ;;  %v652_v15 = vmul.f32 0.0078125, %v650_v14 }
 0x22b   : > { %v654_v16 = vadd.f32 1e-05, %v652_v15 }
 0x22d   : > { %5135 = vrsqrt.f32 %v654_v16 }
 0x233   : > { %v5134_v17 = vpop.eup %5133 }
 0x234   : > { %v657_v18 = vmul.f32 %v5134_v17, %v643_v4 }
 0x236   : > { %659 = vst [vmem:[#allocation3] sm:$0xff] %v657_v18 }
 0x237   : > { %v5136_v19 = vpop.eup %5135 }
 0x238   : > { %v658_v20 = vmul.f32 %v5136_v19, %v644_v8 }
 0x23a   : > { %660 = vst [vmem:[#allocation3 + $0x8] sm:$0xff] %v658_v20 }
 0x23b PF: > { %v5924_v21 = vld [vmem:[#allocation2] sm:$0xff]  ;;  %v770_v22 = vld [vmem:[%s5914_s22 + $0x8] sm:$0xff]  ;;  %v772_v23 = vld [vmem:[%s5914_s22 + $0x18] sm:$0xff]  ;;  %v5499_v29 = vmov 0.0|0.0   ;;  %v5500_v30 = vmov 0.0   ;;  %vm5501_vm0 = vmmov 0  }
 0x23c   : > { %664 = vadd.xlane.f32.xlu0 %v5924_v21  ;;  %v769_v24 = vld [vmem:[%s5914_s22] sm:$0xff]  ;;  %v4846_v25 = vpack.c.bf16 %v772_v23, %v770_v22  ;;  %v771_v26 = vld [vmem:[%s5914_s22 + $0x10] sm:$0xff]  ;;  %v774_v27 = vld [vmem:[%s5914_s22 + $0x28] sm:$0xff]  ;;  %4822 = vmatprep.subr.bf16.mxu0 %v5499_v29  ;;  %s5502_s7 = smov 112   ;;  %s5504_s2 = smov 80   ;;  %vm987_vm1 = vcmask 130048  }
 0x23d   : > { %v776_v28 = vld [vmem:[%s5914_s22 + $0x38] sm:$0xff]  ;;  %877 = vmatprep.mubr.f32.mxu1 %v5500_v30  ;;  %v4848_v31 = vpack.c.bf16 %v771_v26, %v769_v24  ;;  %v773_v33 = vld [vmem:[%s5914_s22 + $0x20] sm:$0xff]  ;;  %v775_v34 = vld [vmem:[%s5914_s22 + $0x30] sm:$0xff]  ;;  %4624 = vmatprep.mubr.msk.f32.mxu0 %vm5501_vm0, %v5500_v30  ;;  %s5505_s11 = smov 64   ;;  %s5506_s15 = smov 48   ;;  %vm2188_vm2 = vcmask 60416  }
 0x23e   : > { %v4850_v32 = vpack.c.bf16 %v776_v28, %v774_v27  ;;  %v778_v35 = vld [vmem:[%s5914_s22 + $0x48] sm:$0xff]  ;;  %4847 = vmatprep.subr.bf16.mxu1 %v4846_v25  ;;  %v780_v36 = vld [vmem:[%s5914_s22 + $0x58] sm:$0xff]  ;;  %v4852_v37 = vpack.c.bf16 %v775_v34, %v773_v33  ;;  %v777_v39 = vld [vmem:[%s5914_s22 + $0x40] sm:$0xff]  ;;  %s5507_s17 = smov 32   ;;  %vm2365_vm3 = vcmask 64512   ;;  %vm3581_vm4 = vcmask 261120  }
 0x23f   : > { %4849 = vmatpush1.bf16.msra.mxu1 %v4848_v31  ;;  %v4854_v38 = vpack.c.bf16 %v780_v36, %v778_v35  ;;  %v779_v40 = vld [vmem:[%s5914_s22 + $0x50] sm:$0xff]  ;;  %v782_v41 = vld [vmem:[%s5914_s22 + $0x68] sm:$0xff]  ;;  %v784_v42 = vld [vmem:[%s5914_s22 + $0x78] sm:$0xff]  ;;  %vm3583_vm5 = vcmask 392192   ;;  %vm3585_vm6 = vcmask 523264   ;;  %vm3587_vm7 = vcmask 654336  }
 0x240   : > { %4851 = vmatprep.subr.bf16.mxu1 %v4850_v32  ;;  %v4856_v43 = vpack.c.bf16 %v779_v40, %v777_v39  ;;  %v676_v44 = vld [vmem:[%s5884_s4] sm:$0xff]  ;;  %v4858_v45 = vpack.c.bf16 %v784_v42, %v782_v41  ;;  %v783_v47 = vld [vmem:[%s5914_s22 + $0x70] sm:$0xff]  ;;  %v677_v48 = vld [vmem:[%s5884_s4 + $0x8] sm:$0xff]  ;;  %v803_v40 = vlaneseq  ;;  %vm3589_vm8 = vcmask 785408   ;;  %s5509_s8 = smov [#allocation14]   ;;  %p5080_p13 = scmp.eq.s32.totalorder %s5589_s21, 1 }
 0x241   : > { %v781_v46 = vld [vmem:[%s5914_s22 + $0x60] sm:$0xff]  ;;  %v786_v49 = vld [vmem:[%s5914_s22 + $0x88] sm:$0xff]  ;;  %v788_v50 = vld [vmem:[%s5914_s22 + $0x98] sm:$0xff]  ;;  %v4823_v51 = vpack.c.bf16 %v677_v48, %v676_v44  ;;  %vm3591_vm9 = vcmask 916480   ;;  %s4143_s10 = sshll.u32 %s5509_s8, 4  ;;  %s4144_s10 = int_to_ptr.vmem [resolvable:$true] %s4143_s10 }
 0x242   : > { %v678_v52 = vld [vmem:[%s5884_s4 + $0x10] sm:$0xff]  ;;  %v679_v53 = vld [vmem:[%s5884_s4 + $0x18] sm:$0xff]  ;;  %v4860_v54 = vpack.c.bf16 %v783_v47, %v781_v46  ;;  %v785_v55 = vld [vmem:[%s5914_s22 + $0x80] sm:$0xff]  ;;  %v4862_v57 = vpack.c.bf16 %v788_v50, %v786_v49  ;;  %v5992_v41 = vshrl.u32 %v803_v40, 7  ;;  %s5412_s27 = scalar_lea.vmem %s4144_s10, 128  ;;  %p5419_p0 = scmp.lt.s32.totalorder %s4144_s10, %s4144_s10 }
 0x243   : > { %4853 = vmatpush1.bf16.msra.mxu1 %v4852_v37  ;;  %4824 = vmatpush3.bf16.msra.mxu0 %v4823_v51  ;;  %v4826_v56 = vpack.c.bf16 %v679_v53, %v678_v52  ;;  %v787_v58 = vld [vmem:[%s5914_s22 + $0x90] sm:$0xff]  ;;  %v680_v59 = vld [vmem:[%s5884_s4 + $0x20] sm:$0xff]  ;;  %v681_v60 = vld [vmem:[%s5884_s4 + $0x28] sm:$0xff]  ;;  %p5413_p1 = scmp.ne.s32.totalorder %s4144_s10, %s5412_s27  ;;  %p5420_p4 = scmp.lt.s32.totalorder %s5412_s27, %s5412_s27 }
 0x244   : > { %4855 = vmatprep.subr.bf16.mxu1 %v4854_v38  ;;  %4825 = vmatprep.subr.bf16.mxu0 %v5499_v29  ;;  %v790_v61 = vld [vmem:[%s5914_s22 + $0xa8] sm:$0xff]  ;;  %v792_v62 = vld [vmem:[%s5914_s22 + $0xb8] sm:$0xff]  ;;  %v4864_v63 = vpack.c.bf16 %v787_v58, %v785_v55  ;;  %v789_v0 = vld [vmem:[%s5914_s22 + $0xa0] sm:$0xff]  ;;  %v4829_v1 = vpack.c.bf16 %v681_v60, %v680_v59  ;;  %v805_v42 = vsub.s32 0, %v5992_v41  ;;  %v809_v44 = vsub.s32 1, %v5992_v41 }
 0x245   : > { %v4866_v2 = vpack.c.bf16 %v792_v62, %v790_v61  ;;  %v791_v3 = vld [vmem:[%s5914_s22 + $0xb0] sm:$0xff]  ;;  %v683_v5 = vld [vmem:[%s5884_s4 + $0x38] sm:$0xff]  ;;  %v794_v6 = vld [vmem:[%s5914_s22 + $0xc8] sm:$0xff]  ;;  %p5414_p8 = pnand %p5413_p1, %p5080_p13  ;;  %p5421_p9 = por %p5420_p4, %p5419_p0 }
 0x246   : > { %v682_v4 = vld [vmem:[%s5884_s4 + $0x30] sm:$0xff]  ;;  %v796_v7 = vld [vmem:[%s5914_s22 + $0xd8] sm:$0xff]  ;;  %v4868_v8 = vpack.c.bf16 %v791_v3, %v789_v0  ;;  %v793_v11 = vld [vmem:[%s5914_s22 + $0xc0] sm:$0xff] }
 0x247   : > { %4857 = vmatpush1.bf16.msra.mxu1 %v4856_v43  ;;  %4827 = vmatpush3.bf16.msra.mxu0 %v4826_v56  ;;  %v4832_v9 = vpack.c.bf16 %v683_v5, %v682_v4  ;;  %v4870_v10 = vpack.c.bf16 %v796_v7, %v794_v6  ;;  %v795_v12 = vld [vmem:[%s5914_s22 + $0xd0] sm:$0xff]  ;;  %v798_v13 = vld [vmem:[%s5914_s22 + $0xe8] sm:$0xff]  ;;  %v800_v14 = vld [vmem:[%s5914_s22 + $0xf8] sm:$0xff]  ;;  %p5415_p6 = pneg %p5414_p8 }
 0x248   : > { %4859 = vmatprep.subr.bf16.mxu1 %v4858_v45  ;;  %4828 = vmatprep.subr.bf16.mxu0 %v5499_v29  ;;  %v4872_v15 = vpack.c.bf16 %v795_v12, %v793_v11  ;;  %v4874_v16 = vpack.c.bf16 %v800_v14, %v798_v13  ;;  %v797_v17 = vld [vmem:[%s5914_s22 + $0xe0] sm:$0xff]  ;;  %v799_v18 = vld [vmem:[%s5914_s22 + $0xf0] sm:$0xff]  ;;  %v662_v20 = vld [vmem:[#allocation3] sm:$0xff] }
 0x249   : > { %v4876_v19 = vpack.c.bf16 %v799_v18, %v797_v17  ;;  %v663_v22 = vld [vmem:[#allocation3 + $0x8] sm:$0xff]  ;;  %v685_v28 = vld [vmem:[%s5884_s4 + $0x48] sm:$0xff]  ;;  %v686_v32 = vld [vmem:[%s5884_s4 + $0x50] sm:$0xff]  ;;  %p5422_p7 = pnand %p5421_p9, %p5415_p6 }
 0x24a   : > { %v684_v27 = vld [vmem:[%s5884_s4 + $0x40] sm:$0xff]  ;;  %v687_v33 = vld [vmem:[%s5884_s4 + $0x58] sm:$0xff]  ;;  %v689_v36 = vld [vmem:[%s5884_s4 + $0x68] sm:$0xff] }
 0x24b   : > { %4861 = vmatpush1.bf16.msra.mxu1 %v4860_v54  ;;  %4830 = vmatpush3.bf16.msra.mxu0 %v4829_v1  ;;  %v4835_v31 = vpack.c.bf16 %v685_v28, %v684_v27  ;;  %v4838_v34 = vpack.c.bf16 %v687_v33, %v686_v32  ;;  %v688_v35 = vld [vmem:[%s5884_s4 + $0x60] sm:$0xff]  ;;  %v690_v37 = vld [vmem:[%s5884_s4 + $0x70] sm:$0xff]  ;;  %v691_v38 = vld [vmem:[%s5884_s4 + $0x78] sm:$0xff]  ;;  %s5503_s4 = smov 96  }
 0x24c   : > { %4863 = vmatprep.subr.bf16.mxu1 %v4862_v57  ;;  %4831 = vmatprep.subr.bf16.mxu0 %v5499_v29  ;;  %v4844_v39 = vpack.c.bf16 %v691_v38, %v690_v37  ;;  %v801_v43 = vld [vmem:[%s5902_s6] sm:$0x3] }
 0x24d   : > { %v806_v45 = vrot.slane %v801_v43, %v805_v42  ;;  %v810_v46 = vrot.slane %v801_v43, %v809_v44  ;;  %v4365_v62 = vld [vmem:[%s616_s20] ss:$0 sm:$0xff]  ;;  %s5508_s20 = smov 16  }
 0x24f   : > { %4865 = vmatpush1.bf16.msra.mxu1 %v4864_v63  ;;  %4833 = vmatpush3.bf16.msra.mxu0 %v4832_v9 }
 0x250   : > { %4867 = vmatprep.subr.bf16.mxu1 %v4866_v2  ;;  %4834 = vmatprep.subr.bf16.mxu0 %v5499_v29 }
 0x253   : > { %4869 = vmatpush1.bf16.msra.mxu1 %v4868_v8  ;;  %4836 = vmatpush3.bf16.msra.mxu0 %v4835_v31 }
 0x254   : > { %4871 = vmatprep.subr.bf16.mxu1 %v4870_v10  ;;  %4837 = vmatprep.subr.bf16.mxu0 %v5499_v29 }
 0x257   : > { %4873 = vmatpush1.bf16.msra.mxu1 %v4872_v15  ;;  %4839 = vmatpush3.bf16.msra.mxu0 %v4838_v34 }
 0x258   : > { %4875 = vmatprep.subr.bf16.mxu1 %v4874_v16  ;;  %4840 = vmatprep.subr.bf16.mxu0 %v5499_v29 }
 0x25b   : > { %4877 = vmatpush1.bf16.msra.mxu1 %v4876_v19 }
 0x25c   : > { %4667 = vmatprep.subr.mxu1 %v5500_v30 }
 0x25e   : > { %878 = vmatmul.mubr.f32.vlgmr.msra.gmra.mrb[0].mxu1 %v662_v20 }
 0x25f   : > { %883 = vmatprep.mubr.f32.mxu1 %v5500_v30 }
 0x262   : > { %884 = vmatmul.mubr.f32.gmra.mrb[2].mxu1 %v663_v22 }
 0x263   : > { %4669 = vmatprep.mubr.msk.f32.mxu1 %vm5501_vm0, %v5500_v30 }
 0x2c9   : > { %v665_v23 = vpop.xlane.xlu0 %664 }
 0x2ca   : > { %v667_v24 = vmul.f32 0.0078125, %v665_v23 }
 0x2cc   : > { %v668_v25 = vsub.f32 %v5924_v21, %v667_v24  ;;  %v4841_v21 = vpack.c.bf16 %v689_v36, %v688_v35 }
 0x2ce   : > { %v669_v26 = vmul.f32 %v668_v25, %v668_v25  ;;  %4842 = vmatpush3.bf16.msra.mxu0 %v4841_v21 }
 0x2cf   : > { %4843 = vmatprep.subr.bf16.mxu0 %v5499_v29 }
 0x2d0   : > { %670 = vadd.xlane.f32.xlu0 %v669_v26 }
 0x2d2   : > { %4845 = vmatpush3.bf16.msra.mxu0 %v4844_v39 }
 0x2d3   : > { %4627 = vmatprep.subr.mxu0 %v5500_v30 }
 0x331   : > { %v879_v47 = vpop.f32.mrb[0].mxu1 }
 0x332   : > { %v880_v48 = vadd.f32 %v879_v47, %v806_v45  ;;  %v881_v49 = vpop.f32.mrb[1].mxu1 }
 0x333   : > { %v6001_v50 = vadd.f32 %v881_v49, %v810_v46 }
 0x334   : > { %907 = vrot.lane.b32.xlu1 %v880_v48, %s5502_s7 }
 0x335   : > { %v885_v51 = vpop.f32.mrb[2].mxu1 }
 0x336   : > { %v886_v52 = vadd.f32 %v885_v51, %v806_v45  ;;  %v887_v53 = vpop.f32.mrb[3].mxu1 }
 0x337   : > { %v6004_v54 = vadd.f32 %v887_v53, %v810_v46 }
 0x338   : > { %911 = vrot.lane.b32.xlu1 %v880_v48, %s5503_s4  ;;  %909 = vrot.lane.b32.xlu0 %v886_v52, %s5502_s7 }
 0x33c   : > { %915 = vrot.lane.b32.xlu1 %v880_v48, %s5504_s2  ;;  %919 = vrot.lane.b32.xlu0 %v880_v48, %s5505_s11 }
 0x340   : > { %913 = vrot.lane.b32.xlu1 %v886_v52, %s5503_s4  ;;  %925 = vrot.lane.b32.xlu0 %v886_v52, %s5506_s15 }
 0x35d   : > { %v671_v55 = vpop.xlane.xlu0 %670 }
 0x35e   : > { %v672_v56 = vmul.f32 0.0078125, %v671_v55 }
 0x360   : > { %v673_v57 = vadd.f32 1e-05, %v672_v56 }
 0x362   : > { %5137 = vrsqrt.f32 %v673_v57 }
 0x36c   : > { %v5138_v58 = vpop.eup %5137 }
 0x36d   : > { %v675_v59 = vmul.f32 %v5138_v58, %v668_v25 }
 0x36f   : > { %4625 = vmatmul.mubr.f32.vlgmr.msra.gmra.mrb[0].mxu0 %v675_v59 }
 0x370   : > { %4628 = vmatpush3.xpose.msk.msra.mxu0 %vm987_vm1, %v880_v48  ;;  %4629 = vmatprep.mubr.msk.f32.mxu0 %vm5501_vm0, %v5500_v30 }
 0x371   : > { %4632 = vmatprep.subr.mxu0 %v5500_v30 }
 0x3a6   : > { %v908_v3 = vpop.permute.xlu1 %907 }
 0x3aa   : > { %v910_v60 = vpop.permute.xlu0 %909  ;;  %v912_v4 = vpop.permute.xlu1 %911 }
 0x3ae   : > { %v920_v61 = vpop.permute.xlu0 %919  ;;  %v916_v5 = vpop.permute.xlu1 %915 }
 0x3af   : > { %4668 = vmatpush3.xpose.msk.msra.mxu1 %vm987_vm1, %v920_v61 }
 0x3b0   : > { %4677 = vmatprep.subr.mxu1 %v5500_v30 }
 0x3b2   : > { %v914_v6 = vpop.permute.xlu1 %913  ;;  %v926_v7 = vpop.permute.xlu0 %925 }
 0x442   : > { %v765_v63 = vpop.f32.mrb[0].mxu0 }
 0x443   : > { %v766_v0 = vadd.f32 %v4365_v62, %v765_v63  ;;  %v4626_v1 = vpop.f32.mrb[1].mxu0 }
 0x445   : > { %897 = vrot.lane.b32.xlu0 %v766_v0, %s5505_s11  ;;  %891 = vrot.lane.b32.xlu1 %v766_v0, %s5502_s7  ;;  %v979_v2 = vcombine.high %v766_v0, %v766_v0 }
 0x446   : > { %4630 = vmatmul.mubr.msk.f32.vlgmr.msra.gmra.mrb[2].mxu0 %vm987_vm1, %v766_v0 }
 0x447   : > { %4633 = vmatpush3.xpose.msk.msra.mxu0 %vm987_vm1, %v886_v52  ;;  %4634 = vmatprep.mubr.msk.f32.mxu0 %vm5501_vm0, %v5500_v30 }
 0x448   : > { %4637 = vmatprep.subr.mxu0 %v5500_v30 }
 0x449   : > { %927 = vrot.lane.b32.xlu0 %v880_v48, %s5507_s17  ;;  %917 = vrot.lane.b32.xlu1 %v886_v52, %s5504_s2 }
 0x44a   : > { %4635 = vmatmul.mubr.msk.f32.vlgmr.msra.gmra.mrb[4].mxu0 %vm987_vm1, %v979_v2 }
 0x44b   : > { %4638 = vmatpush3.xpose.msk.msra.mxu0 %vm987_vm1, %v908_v3  ;;  %4639 = vmatprep.mubr.msk.f32.mxu0 %vm5501_vm0, %v5500_v30 }
 0x44c   : > { %4642 = vmatprep.subr.mxu0 %v5500_v30 }
 0x44d   : > { %901 = vrot.lane.b32.xlu0 %v766_v0, %s5507_s17  ;;  %893 = vrot.lane.b32.xlu1 %v766_v0, %s5503_s4 }
 0x451   : > { %933 = vrot.lane.b32.xlu0 %v886_v52, %s5508_s20  ;;  %921 = vrot.lane.b32.xlu1 %v886_v52, %s5505_s11 }
 0x455   : > { %939 = vrot.lane.b32.xlu0 %v6004_v54, %s5502_s7  ;;  %895 = vrot.lane.b32.xlu1 %v766_v0, %s5504_s2 }
 0x459   : > { %923 = vrot.lane.b32.xlu1 %v880_v48, %s5506_s15 }
 0x45d   : > { %929 = vrot.lane.b32.xlu1 %v886_v52, %s5507_s17 }
 0x461   : > { %899 = vrot.lane.b32.xlu1 %v766_v0, %s5506_s15 }
 0x465   : > { %931 = vrot.lane.b32.xlu1 %v880_v48, %s5508_s20 }
 0x469   : > { %903 = vrot.lane.b32.xlu1 %v766_v0, %s5508_s20 }
 0x46d   : > { %937 = vrot.lane.b32.xlu1 %v6001_v50, %s5502_s7 }
 0x471   : > { %943 = vrot.lane.b32.xlu1 %v6001_v50, %s5503_s4 }
 0x4b7   : > { %v892_v8 = vpop.permute.xlu1 %891  ;;  %v898_v9 = vpop.permute.xlu0 %897 }
 0x4b8   : > { %4640 = vmatmul.mubr.msk.f32.vlgmr.msra.gmra.mrb[6].mxu0 %vm987_vm1, %v892_v8  ;;  %4670 = vmatmul.mubr.msk.f32.vlgmr.msra.gmra.mrb[4].mxu1 %vm987_vm1, %v898_v9  ;;  %v980_v10 = vcombine.high %v892_v8, %v892_v8  ;;  %v983_v18 = vcombine.high %v898_v9, %v898_v9 }
 0x4b9   : > { %4643 = vmatpush3.xpose.msk.msra.mxu0 %vm987_vm1, %v910_v60  ;;  %4644 = vmatprep.mubr.msk.f32.mxu0 %vm5501_vm0, %v5500_v30 }
 0x4ba   : > { %4647 = vmatprep.subr.mxu0 %v5500_v30  ;;  %4679 = vmatprep.mubr.msk.f32.mxu1 %vm5501_vm0, %v5500_v30 }
 0x4bb   : > { %v918_v11 = vpop.permute.xlu1 %917  ;;  %v928_v19 = vpop.permute.xlu0 %927 }
 0x4bc   : > { %4645 = vmatmul.mubr.msk.f32.vlgmr.msra.gmra.mrb[8].mxu0 %vm987_vm1, %v980_v10 }
 0x4bd   : > { %4648 = vmatpush3.xpose.msk.msra.mxu0 %vm987_vm1, %v912_v4  ;;  %4649 = vmatprep.mubr.msk.f32.mxu0 %vm5501_vm0, %v5500_v30 }
 0x4be   : > { %4652 = vmatprep.subr.mxu0 %v5500_v30 }
 0x4bf   : > { %v894_v12 = vpop.permute.xlu1 %893  ;;  %v902_v23 = vpop.permute.xlu0 %901 }
 0x4c0   : > { %4650 = vmatmul.mubr.msk.f32.vlgmr.msra.gmra.mrb[10].mxu0 %vm987_vm1, %v894_v12  ;;  %v981_v13 = vcombine.high %v894_v12, %v894_v12  ;;  %v985_v26 = vcombine.high %v902_v23, %v902_v23 }
 0x4c1   : > { %4653 = vmatpush3.xpose.msk.msra.mxu0 %vm987_vm1, %v914_v6  ;;  %4654 = vmatprep.mubr.msk.f32.mxu0 %vm5501_vm0, %v5500_v30 }
 0x4c2   : > { %4657 = vmatprep.subr.mxu0 %v5500_v30 }
 0x4c3   : > { %v922_v14 = vpop.permute.xlu1 %921  ;;  %v934_v27 = vpop.permute.xlu0 %933 }
 0x4c4   : > { %4655 = vmatmul.mubr.msk.f32.vlgmr.msra.gmra.mrb[12].mxu0 %vm987_vm1, %v981_v13 }
 0x4c5   : > { %4658 = vmatpush3.xpose.msk.msra.mxu0 %vm987_vm1, %v916_v5  ;;  %4659 = vmatprep.mubr.msk.f32.mxu0 %vm5501_vm0, %v5500_v30 }
 0x4c6   : > { %4662 = vmatprep.subr.mxu0 %v5500_v30 }
 0x4c7   : > { %v896_v15 = vpop.permute.xlu1 %895 }
 0x4c8   : > { %4660 = vmatmul.mubr.msk.f32.vlgmr.msra.gmra.mrb[14].mxu0 %vm987_vm1, %v896_v15  ;;  %v982_v16 = vcombine.high %v896_v15, %v896_v15 }
 0x4c9   : > { %4663 = vmatpush3.xpose.msk.msra.mxu0 %vm987_vm1, %v918_v11  ;;  %4664 = vmatprep.mubr.msk.f32.mxu0 %vm5501_vm0, %v5500_v30 }
 0x4ca   : > { %4672 = vmatprep.subr.mxu0 %v5500_v30 }
 0x4cb   : > { %v924_v17 = vpop.permute.xlu1 %923 }
 0x4cc   : > { %4665 = vmatmul.mubr.msk.f32.vlgmr.msra.gmra.mrb[16].mxu0 %vm987_vm1, %v982_v16  ;;  %4678 = vmatpush3.xpose.msk.msra.mxu1 %vm987_vm1, %v924_v17 }
 0x4cd   : > { %4673 = vmatpush3.xpose.msk.msra.mxu0 %vm987_vm1, %v922_v14  ;;  %4674 = vmatprep.mubr.msk.f32.mxu0 %vm5501_vm0, %v5500_v30 }
 0x4ce   : > { %4682 = vmatprep.subr.mxu0 %v5500_v30  ;;  %4687 = vmatprep.subr.mxu1 %v5500_v30 }
 0x4cf   : > { %v930_v20 = vpop.permute.xlu1 %929 }
 0x4d0   : > { %4675 = vmatmul.mubr.msk.f32.vlgmr.msra.gmra.mrb[18].mxu0 %vm987_vm1, %v983_v18 }
 0x4d1   : > { %4683 = vmatpush3.xpose.msk.msra.mxu0 %vm987_vm1, %v926_v7  ;;  %4684 = vmatprep.mubr.msk.f32.mxu0 %vm5501_vm0, %v5500_v30 }
 0x4d2   : > { %4692 = vmatprep.subr.mxu0 %v5500_v30 }
 0x4d3   : > { %v900_v22 = vpop.permute.xlu1 %899 }
 0x4d4   : > { %v984_v24 = vcombine.high %v900_v22, %v900_v22  ;;  %4680 = vmatmul.mubr.msk.f32.vlgmr.msra.gmra.mrb[6].mxu1 %vm987_vm1, %v900_v22 }
 0x4d5   : > { %4688 = vmatpush3.xpose.msk.msra.mxu1 %vm987_vm1, %v928_v19  ;;  %4689 = vmatprep.mubr.msk.f32.mxu1 %vm5501_vm0, %v5500_v30 }
 0x4d6   : > { %4685 = vmatmul.mubr.msk.f32.vlgmr.msra.gmra.mrb[20].mxu0 %vm987_vm1, %v984_v24  ;;  %4697 = vmatprep.subr.mxu1 %v5500_v30 }
 0x4d7   : > { %4693 = vmatpush3.xpose.msk.msra.mxu0 %vm987_vm1, %v930_v20  ;;  %v932_v25 = vpop.permute.xlu1 %931  ;;  %4694 = vmatprep.mubr.msk.f32.mxu0 %vm5501_vm0, %v5500_v30 }
 0x4d8   : > { %4690 = vmatmul.mubr.msk.f32.vlgmr.msra.gmra.mrb[8].mxu1 %vm987_vm1, %v902_v23  ;;  %4702 = vmatprep.subr.mxu0 %v5500_v30 }
 0x4d9   : > { %4698 = vmatpush3.xpose.msk.msra.mxu1 %vm987_vm1, %v932_v25  ;;  %4699 = vmatprep.mubr.msk.f32.mxu1 %vm5501_vm0, %v5500_v30 }
 0x4da   : > { %4695 = vmatmul.mubr.msk.f32.vlgmr.msra.gmra.mrb[22].mxu0 %vm987_vm1, %v985_v26  ;;  %4707 = vmatprep.subr.mxu1 %v5500_v30 }
 0x4db   : > { %4703 = vmatpush3.xpose.msk.msra.mxu0 %vm987_vm1, %v934_v27  ;;  %v904_v28 = vpop.permute.xlu1 %903  ;;  %4704 = vmatprep.mubr.msk.f32.mxu0 %vm5501_vm0, %v5500_v30 }
 0x4dc   : > { %v986_v31 = vcombine.high %v904_v28, %v904_v28  ;;  %4700 = vmatmul.mubr.msk.f32.vlgmr.msra.gmra.mrb[10].mxu1 %vm987_vm1, %v904_v28  ;;  %4712 = vmatprep.subr.mxu0 %v5500_v30 }
 0x4dd   : > { %4708 = vmatpush3.msra.mxu1 %v6001_v50  ;;  %4709 = vmatprep.mubr.msk.f32.mxu1 %vm5501_vm0, %v5500_v30 }
 0x4de   : > { %4705 = vmatmul.mubr.msk.f32.vlgmr.msra.gmra.mrb[24].mxu0 %vm987_vm1, %v986_v31  ;;  %4717 = vmatprep.subr.mxu1 %v5500_v30 }
 0x4df   : > { %4713 = vmatpush3.msra.mxu0 %v6004_v54  ;;  %4714 = vmatprep.mubr.msk.f32.mxu0 %vm5501_vm0, %v5500_v30 }
 0x4e0   : > { %4722 = vmatprep.subr.mxu0 %v5500_v30 }
 0x519   : > { %v1058_v32 = vpop.f32.mrb[2].mxu0 }
 0x51a   : > { %v6123_v33 = vmul.f32 0.25, %v1058_v32  ;;  %v4631_v34 = vpop.f32.mrb[3].mxu0 }
 0x51c   : > { %v2189_v35 = vsel %vm2188_vm2, %v6123_v33, -inf }
 0x51d   : > { %2190 = vmax.xlane.f32.xlu0 %v2189_v35  ;;  %v1132_v36 = vpop.f32.mrb[4].mxu0  ;;  %v6187_v35 = vpop.permute.xlu0 %939 }
 0x51e   : > { %v6127_v21 = vmul.f32 0.25, %v1132_v36  ;;  %v4636_v37 = vpop.f32.mrb[5].mxu0 }
 0x520   : > { %v2192_v38 = vsel %vm2188_vm2, %v6127_v21, -inf }
 0x521   : > { %2193 = vmax.xlane.f32.xlu1 %v2192_v38 }
 0x58b   : > { %v1206_v39 = vpop.f32.mrb[6].mxu0  ;;  %v1650_v40 = vpop.f32.mrb[4].mxu1 }
 0x58c   : > { %v6131_v43 = vmul.f32 0.25, %v1206_v39  ;;  %v6133_v45 = vmul.f32 0.25, %v1650_v40  ;;  %v4641_v46 = vpop.f32.mrb[7].mxu0  ;;  %v4671_v47 = vpop.f32.mrb[5].mxu1 }
 0x58e   : > { %v2195_v48 = vsel %vm2188_vm2, %v6131_v43, -inf  ;;  %v2213_v49 = vsel %vm2188_vm2, %v6133_v45, -inf }
 0x58f   : > { %2196 = vmax.xlane.f32.xlu0 %v2195_v48  ;;  %v1280_v51 = vpop.f32.mrb[8].mxu0  ;;  %2214 = vmax.xlane.f32.xlu1 %v2213_v49 }
 0x590   : > { %v6139_v52 = vmul.f32 0.25, %v1280_v51  ;;  %v4646_v53 = vpop.f32.mrb[9].mxu0  ;;  %v6202_v51 = vpop.permute.xlu1 %937 }
 0x592   : > { %v2198_v55 = vsel %vm2188_vm2, %v6139_v52, -inf }
 0x593   : > { %2199 = vmax.xlane.f32.xlu0 %v2198_v55  ;;  %v1354_v56 = vpop.f32.mrb[10].mxu0 }
 0x594   : > { %v4651_v57 = vpop.f32.mrb[11].mxu0  ;;  %v6149_v8 = vmul.f32 0.25, %v1354_v56  ;;  %v6208_v55 = vpop.permute.xlu1 %943 }
 0x596   : > { %v2201_v16 = vsel %vm2188_vm2, %v6149_v8, -inf }
 0x597   : > { %v1428_v58 = vpop.f32.mrb[12].mxu0 }
 0x598   : > { %v6143_v59 = vmul.f32 0.25, %v1428_v58  ;;  %v4656_v60 = vpop.f32.mrb[13].mxu0 }
 0x59a   : > { %v2204_v61 = vsel %vm2188_vm2, %v6143_v59, -inf }
 0x59b   : > { %2205 = vmax.xlane.f32.xlu0 %v2204_v61  ;;  %v1502_v62 = vpop.f32.mrb[14].mxu0 }
 0x59c   : > { %v4661_v63 = vpop.f32.mrb[15].mxu0  ;;  %v6165_v24 = vmul.f32 0.25, %v1502_v62 }
 0x59e   : > { %v2207_v26 = vsel %vm2188_vm2, %v6165_v24, -inf }
 0x59f   : > { %v1576_v0 = vpop.f32.mrb[16].mxu0 }
 0x5a0   : > { %v4666_v1 = vpop.f32.mrb[17].mxu0  ;;  %v6173_v27 = vmul.f32 0.25, %v1576_v0 }
 0x5a2   : > { %v2210_v31 = vsel %vm2188_vm2, %v6173_v27, -inf }
 0x5a3   : > { %v1724_v2 = vpop.f32.mrb[18].mxu0 }
 0x5a4   : > { %v4676_v3 = vpop.f32.mrb[19].mxu0  ;;  %v6177_v28 = vmul.f32 0.25, %v1724_v2 }
 0x5a6   : > { %v2216_v34 = vsel %vm2188_vm2, %v6177_v28, -inf }
 0x5a7   : > { %v1798_v4 = vpop.f32.mrb[6].mxu1 }
 0x5a8   : > { %v6147_v5 = vmul.f32 0.25, %v1798_v4  ;;  %v4681_v6 = vpop.f32.mrb[7].mxu1 }
 0x5a9   : > { %v1872_v7 = vpop.f32.mrb[20].mxu0 }
 0x5aa   : > { %v4686_v9 = vpop.f32.mrb[21].mxu0  ;;  %v2219_v10 = vsel %vm2188_vm2, %v6147_v5, -inf  ;;  %v6183_v32 = vmul.f32 0.25, %v1872_v7  ;;  %v2191_v38 = vpop.xlane.xlu0 %2190 }
 0x5ab   : > { %2220 = vmax.xlane.f32.xlu1 %v2219_v10  ;;  %v1946_v11 = vpop.f32.mrb[8].mxu1  ;;  %v2237_v46 = vsub.f32 %v6123_v33, %v2191_v38 }
 0x5ac   : > { %v4691_v12 = vpop.f32.mrb[9].mxu1  ;;  %v6153_v14 = vmul.f32 0.25, %v1946_v11  ;;  %v2222_v37 = vsel %vm2188_vm2, %v6183_v32, -inf }
 0x5ad   : > { %v2020_v13 = vpop.f32.mrb[22].mxu0  ;;  %v2253_v48 = vmul.f32 1.442695, %v2237_v46 }
 0x5ae   : > { %v4696_v15 = vpop.f32.mrb[23].mxu0  ;;  %v2225_v23 = vsel %vm2188_vm2, %v6153_v14, -inf  ;;  %v6189_v36 = vmul.f32 0.25, %v2020_v13  ;;  %v2194_v33 = vpop.xlane.xlu1 %2193 }
 0x5af   : > { %2202 = vmax.xlane.f32.xlu1 %v2201_v16  ;;  %v2094_v17 = vpop.f32.mrb[10].mxu1  ;;  %5139 = vpow2.f32 %v2253_v48  ;;  %v2238_v56 = vsub.f32 %v6127_v21, %v2194_v33 }
 0x5b0   : > { %v4701_v18 = vpop.f32.mrb[11].mxu1  ;;  %v6159_v20 = vmul.f32 0.25, %v2094_v17  ;;  %v2228_v40 = vsel %vm2188_vm2, %v6189_v36, -inf }
 0x5b1   : > { %949 = vrot.lane.b32.xlu0 %v6001_v50, %s5504_s2  ;;  %v2168_v19 = vpop.f32.mrb[24].mxu0  ;;  %v2255_v57 = vmul.f32 1.442695, %v2238_v56 }
 0x5b2   : > { %v4706_v22 = vpop.f32.mrb[25].mxu0  ;;  %v2231_v25 = vsel %vm2188_vm2, %v6159_v20, -inf  ;;  %v6193_v39 = vmul.f32 0.25, %v2168_v19 }
 0x5b3   : > { %2226 = vmax.xlane.f32.xlu1 %v2225_v23  ;;  %5141 = vpow2.f32 %v2255_v57 }
 0x5b4   : > { %v2234_v47 = vsel %vm2188_vm2, %v6193_v39, -inf }
 0x5b5   : > { %955 = vrot.lane.b32.xlu0 %v6001_v50, %s5505_s11 }
 0x5b7   : > { %2232 = vmax.xlane.f32.xlu1 %v2231_v25 }
 0x5b9   : > { %v6200_v49 = vpop.eup %5139 }
 0x5ba   : > { %v2285_v53 = vsel %vm2188_vm2, %v6200_v49, 0.0 }
 0x5bb   : > { %2208 = vmax.xlane.f32.xlu1 %v2207_v26 }
 0x5bd   : > { %v6211_v58 = vpop.eup %5141 }
 0x5be   : > { %v2288_v60 = vsel %vm2188_vm2, %v6211_v58, 0.0 }
 0x5cc   : > { %945 = vrot.lane.b32.xlu1 %v6004_v54, %s5503_s4 }
 0x5d0   : > { %951 = vrot.lane.b32.xlu1 %v6004_v54, %s5504_s2 }
 0x5d4   : > { %2211 = vmax.xlane.f32.xlu0 %v2210_v31  ;;  %957 = vrot.lane.b32.xlu1 %v6004_v54, %s5505_s11 }
 0x5d8   : > { %2217 = vmax.xlane.f32.xlu0 %v2216_v34 }
 0x5dc   : > { %2223 = vmax.xlane.f32.xlu0 %v2222_v37 }
 0x5e0   : > { %2229 = vmax.xlane.f32.xlu0 %v2228_v40 }
 0x5e4   : > { %2235 = vmax.xlane.f32.xlu0 %v2234_v47 }
 0x5f8   : > { %2286 = vadd.xlane.f32.xlu1 %v2285_v53 }
 0x5fa   : > { %961 = vrot.lane.b32.xlu0 %v6001_v50, %s5506_s15 }
 0x619   : > { %2289 = vadd.xlane.f32.xlu0 %v2288_v60 }
 0x61c   : > { %v2215_v61 = vpop.xlane.xlu1 %2214  ;;  %v2197_v62 = vpop.xlane.xlu0 %2196 }
 0x61d   : > { %v2245_v63 = vsub.f32 %v6133_v45, %v2215_v61  ;;  %v2239_v0 = vsub.f32 %v6131_v43, %v2197_v62 }
 0x61f   : > { %v2257_v1 = vmul.f32 1.442695, %v2239_v0  ;;  %v2269_v2 = vmul.f32 1.442695, %v2245_v63 }
 0x620   : > { %v2200_v3 = vpop.xlane.xlu0 %2199 }
 0x621   : > { %v2240_v4 = vsub.f32 %v6139_v52, %v2200_v3  ;;  %5143 = vpow2.f32 %v2257_v1 }
 0x622   : > { %5145 = vpow2.f32 %v2269_v2 }
 0x623   : > { %v2259_v21 = vmul.f32 1.442695, %v2240_v4 }
 0x625   : > { %5147 = vpow2.f32 %v2259_v21 }
 0x628   : > { %v2206_v6 = vpop.xlane.xlu0 %2205 }
 0x629   : > { %v2242_v7 = vsub.f32 %v6143_v59, %v2206_v6 }
 0x62b   : > { %v2263_v9 = vmul.f32 1.442695, %v2242_v7  ;;  %v6219_v10 = vpop.eup %5143 }
 0x62c   : > { %v2291_v45 = vsel %vm2188_vm2, %v6219_v10, 0.0  ;;  %v6223_v43 = vpop.eup %5145  ;;  %v6260_v56 = vpop.permute.xlu0 %949 }
 0x62d   : > { %5149 = vpow2.f32 %v2263_v9  ;;  %2292 = vadd.xlane.f32.xlu1 %v2291_v45  ;;  %v2309_v12 = vsel %vm2188_vm2, %v6223_v43, 0.0 }
 0x62f   : > { %v6225_v11 = vpop.eup %5147 }
 0x630   : > { %v2294_v52 = vsel %vm2188_vm2, %v6225_v11, 0.0  ;;  %v6264_v60 = vpop.permute.xlu0 %955 }
 0x631   : > { %2295 = vadd.xlane.f32.xlu0 %v2294_v52  ;;  %2310 = vadd.xlane.f32.xlu1 %v2309_v12 }
 0x637   : > { %v6231_v59 = vpop.eup %5149 }
 0x638   : > { %v2221_v13 = vpop.xlane.xlu1 %2220  ;;  %v2300_v15 = vsel %vm2188_vm2, %v6231_v59, 0.0 }
 0x639   : > { %v2247_v16 = vsub.f32 %v6147_v5, %v2221_v13  ;;  %2301 = vadd.xlane.f32.xlu0 %v2300_v15 }
 0x63b   : > { %v2273_v17 = vmul.f32 1.442695, %v2247_v16 }
 0x63c   : > { %v2203_v18 = vpop.xlane.xlu1 %2202 }
 0x63d   : > { %5151 = vpow2.f32 %v2273_v17  ;;  %v2241_v19 = vsub.f32 %v6149_v8, %v2203_v18 }
 0x63f   : > { %v2261_v22 = vmul.f32 1.442695, %v2241_v19 }
 0x640   : > { %v2227_v23 = vpop.xlane.xlu1 %2226 }
 0x641   : > { %5153 = vpow2.f32 %v2261_v22  ;;  %v2249_v25 = vsub.f32 %v6153_v14, %v2227_v23 }
 0x643   : > { %v2277_v26 = vmul.f32 1.442695, %v2249_v25 }
 0x644   : > { %v2233_v31 = vpop.xlane.xlu1 %2232 }
 0x645   : > { %5155 = vpow2.f32 %v2277_v26  ;;  %v2251_v34 = vsub.f32 %v6159_v20, %v2233_v31 }
 0x647   : > { %v6239_v37 = vpop.eup %5151  ;;  %v2281_v38 = vmul.f32 1.442695, %v2251_v34 }
 0x648   : > { %v2209_v5 = vpop.xlane.xlu1 %2208  ;;  %v2315_v40 = vsel %vm2188_vm2, %v6239_v37, 0.0 }
 0x649   : > { %5157 = vpow2.f32 %v2281_v38  ;;  %v2243_v8 = vsub.f32 %v6165_v24, %v2209_v5  ;;  %2316 = vadd.xlane.f32.xlu1 %v2315_v40 }
 0x64b   : > { %v6244_v46 = vpop.eup %5153  ;;  %v2265_v47 = vmul.f32 1.442695, %v2243_v8 }
 0x64c   : > { %v2297_v14 = vsel %vm2188_vm2, %v6244_v46, 0.0  ;;  %v946_v12 = vpop.permute.xlu1 %945 }
 0x64d   : > { %5159 = vpow2.f32 %v2265_v47  ;;  %2298 = vadd.xlane.f32.xlu1 %v2297_v14 }
 0x64f   : > { %v6248_v20 = vpop.eup %5155  ;;  %967 = vrot.lane.b32.xlu0 %v6001_v50, %s5507_s17 }
 0x650   : > { %v2321_v48 = vsel %vm2188_vm2, %v6248_v20, 0.0 }
 0x651   : > { %2322 = vadd.xlane.f32.xlu1 %v2321_v48 }
 0x653   : > { %v6254_v53 = vpop.eup %5157 }
 0x654   : > { %v2327_v24 = vsel %vm2188_vm2, %v6254_v53, 0.0 }
 0x655   : > { %2328 = vadd.xlane.f32.xlu1 %v2327_v24 }
 0x657   : > { %v6258_v33 = vpop.eup %5159 }
 0x658   : > { %v2303_v57 = vsel %vm2188_vm2, %v6258_v33, 0.0 }
 0x659   : > { %2304 = vadd.xlane.f32.xlu1 %v2303_v57 }
 0x661   : > { %v2212_v61 = vpop.xlane.xlu0 %2211 }
 0x662   : > { %v2244_v62 = vsub.f32 %v6173_v27, %v2212_v61 }
 0x664   : > { %v2267_v63 = vmul.f32 1.442695, %v2244_v62 }
 0x665   : > { %v2218_v0 = vpop.xlane.xlu0 %2217 }
 0x666   : > { %5161 = vpow2.f32 %v2267_v63  ;;  %v2246_v1 = vsub.f32 %v6177_v28, %v2218_v0 }
 0x668   : > { %v2271_v2 = vmul.f32 1.442695, %v2246_v1 }
 0x669   : > { %v2224_v3 = vpop.xlane.xlu0 %2223 }
 0x66a   : > { %5163 = vpow2.f32 %v2271_v2  ;;  %v2248_v4 = vsub.f32 %v6183_v32, %v2224_v3  ;;  %963 = vrot.lane.b32.xlu1 %v6004_v54, %s5506_s15 }
 0x66c   : > { %v2275_v21 = vmul.f32 1.442695, %v2248_v4 }
 0x66d   : > { %v2230_v6 = vpop.xlane.xlu0 %2229 }
 0x66e   : > { %5165 = vpow2.f32 %v2275_v21  ;;  %v2250_v7 = vsub.f32 %v6189_v36, %v2230_v6  ;;  %969 = vrot.lane.b32.xlu1 %v6004_v54, %s5507_s17 }
 0x670   : > { %v6274_v27 = vpop.eup %5161  ;;  %v2279_v9 = vmul.f32 1.442695, %v2250_v7 }
 0x671   : > { %v2236_v28 = vpop.xlane.xlu0 %2235  ;;  %v2306_v45 = vsel %vm2188_vm2, %v6274_v27, 0.0 }
 0x672   : > { %5167 = vpow2.f32 %v2279_v9  ;;  %v2252_v32 = vsub.f32 %v6193_v39, %v2236_v28  ;;  %975 = vrot.lane.b32.xlu1 %v6004_v54, %s5508_s20  ;;  %2307 = vadd.xlane.f32.xlu0 %v2306_v45  ;;  %v952_v39 = vpop.permute.xlu1 %951 }
 0x674   : > { %v6281_v52 = vpop.eup %5163  ;;  %v2283_v36 = vmul.f32 1.442695, %v2252_v32 }
 0x675   : > { %v2312_v13 = vsel %vm2188_vm2, %v6281_v52, 0.0  ;;  %v962_v31 = vpop.permute.xlu0 %961 }
 0x676   : > { %5169 = vpow2.f32 %v2283_v36  ;;  %2313 = vadd.xlane.f32.xlu0 %v2312_v13  ;;  %v6295_v19 = vpop.permute.xlu1 %957 }
 0x678   : > { %v6285_v15 = vpop.eup %5165 }
 0x679   : > { %v2318_v16 = vsel %vm2188_vm2, %v6285_v15, 0.0 }
 0x67a   : > { %2319 = vadd.xlane.f32.xlu0 %v2318_v16 }
 0x67c   : > { %v6289_v17 = vpop.eup %5167 }
 0x67d   : > { %v2324_v54 = vsel %vm2188_vm2, %v6289_v17, 0.0 }
 0x67e   : > { %2325 = vadd.xlane.f32.xlu0 %v2324_v54 }
 0x680   : > { %v6293_v18 = vpop.eup %5169 }
 0x681   : > { %v2330_v22 = vsel %vm2188_vm2, %v6293_v18, 0.0 }
 0x682   : > { %2331 = vadd.xlane.f32.xlu0 %v2330_v22 }
 0x685   : > { %v2287_v23 = vpop.xlane.xlu1 %2286 }
 0x686   : > { %5171 = vrcp.f32 %v2287_v23 }
 0x690   : > { %v5172_v25 = vpop.eup %5171 }
 0x691   : > { %v2334_v26 = vmul.f32 %v5172_v25, %v6200_v49 }
 0x693   : > { %4710 = vmatmul.mubr.msk.f32.vlgmr.msra.gmra.mrb[12].mxu1 %vm2365_vm3, %v2334_v26 }
 0x694   : > { %4718 = vmatpush3.msra.mxu1 %v6202_v51  ;;  %4719 = vmatprep.mubr.msk.f32.mxu1 %vm5501_vm0, %v5500_v30 }
 0x695   : > { %4727 = vmatprep.subr.mxu1 %v5500_v30 }
 0x698   : > { %973 = vrot.lane.b32.xlu0 %v6001_v50, %s5508_s20 }
 0x6a6   : > { %v2290_v34 = vpop.xlane.xlu0 %2289 }
 0x6a7   : > { %5173 = vrcp.f32 %v2290_v34 }
 0x6b1   : > { %v5174_v38 = vpop.eup %5173 }
 0x6b2   : > { %v2336_v5 = vmul.f32 %v5174_v38, %v6211_v58 }
 0x6b4   : > { %4715 = vmatmul.mubr.msk.f32.vlgmr.msra.gmra.mrb[26].mxu0 %vm2365_vm3, %v2336_v5 }
 0x6b5   : > { %4723 = vmatpush3.msra.mxu0 %v6187_v35  ;;  %4724 = vmatprep.mubr.msk.f32.mxu0 %vm5501_vm0, %v5500_v30 }
 0x6b6   : > { %4732 = vmatprep.subr.mxu0 %v5500_v30 }
 0x6ba   : > { %v2293_v49 = vpop.xlane.xlu1 %2292 }
 0x6bb   : > { %5175 = vrcp.f32 %v2293_v49  ;;  %v3593_v49 = vld [vmem:[%s5916_s13] sm:$0xff] }
 0x6be   : > { %v2296_v51 = vpop.xlane.xlu0 %2295 }
 0x6bf   : > { %5177 = vrcp.f32 %v2296_v51  ;;  %v3594_v51 = vld [vmem:[%s5916_s13 + $0x8] sm:$0xff] }
 0x6c5   : > { %v5176_v50 = vpop.eup %5175 }
 0x6c6   : > { %v2302_v40 = vpop.xlane.xlu0 %2301  ;;  %v2338_v8 = vmul.f32 %v5176_v50, %v6219_v10  ;;  %v2311_v10 = vpop.xlane.xlu1 %2310  ;;  %v3595_v50 = vld [vmem:[%s5916_s13 + $0x10] sm:$0xff] }
 0x6c7   : > { %5179 = vrcp.f32 %v2302_v40  ;;  %v4879_v40 = vpack.c.bf16 %v3594_v51, %v3593_v49 }
 0x6c8   : > { %4720 = vmatmul.mubr.msk.f32.vlgmr.msra.gmra.mrb[14].mxu1 %vm2365_vm3, %v2338_v8  ;;  %v3596_v8 = vld [vmem:[%s5916_s13 + $0x18] sm:$0xff] }
 0x6c9   : > { %v5178_v47 = vpop.eup %5177  ;;  %4728 = vmatpush3.msra.mxu1 %v6208_v55  ;;  %4729 = vmatprep.mubr.msk.f32.mxu1 %vm5501_vm0, %v5500_v30 }
 0x6ca   : > { %v2340_v58 = vmul.f32 %v5178_v47, %v6225_v11  ;;  %4737 = vmatprep.subr.mxu1 %v5500_v30  ;;  %v4882_v47 = vpack.c.bf16 %v3596_v8, %v3595_v50 }
 0x6cc   : > { %4725 = vmatmul.mubr.msk.f32.vlgmr.msra.gmra.mrb[28].mxu0 %vm2365_vm3, %v2340_v58  ;;  %v3597_v58 = vld [vmem:[%s5916_s13 + $0x20] sm:$0xff] }
 0x6cd   : > { %4733 = vmatpush3.msra.mxu0 %v946_v12  ;;  %4734 = vmatprep.mubr.msk.f32.mxu0 %vm5501_vm0, %v5500_v30 }
 0x6ce   : > { %4742 = vmatprep.subr.mxu0 %v5500_v30 }
 0x6d1   : > { %v5180_v35 = vpop.eup %5179 }
 0x6d2   : > { %v2344_v14 = vmul.f32 %v5180_v35, %v6231_v59  ;;  %v3598_v35 = vld [vmem:[%s5916_s13 + $0x28] sm:$0xff] }
 0x6d4   : > { %4735 = vmatmul.mubr.msk.f32.vlgmr.msra.gmra.mrb[30].mxu0 %vm2365_vm3, %v2344_v14  ;;  %v3599_v14 = vld [vmem:[%s5916_s13 + $0x30] sm:$0xff] }
 0x6d5   : > { %4743 = vmatpush3.msra.mxu0 %v952_v39  ;;  %4744 = vmatprep.mubr.msk.f32.mxu0 %vm5501_vm0, %v5500_v30 }
 0x6d6   : > { %v2317_v55 = vpop.xlane.xlu1 %2316  ;;  %4752 = vmatprep.subr.mxu0 %v5500_v30 }
 0x6da   : > { %v2299_v11 = vpop.xlane.xlu1 %2298 }
 0x6db   : > { %5181 = vrcp.f32 %v2299_v11 }
 0x6de   : > { %v2323_v48 = vpop.xlane.xlu1 %2322 }
 0x6e2   : > { %v2329_v24 = vpop.xlane.xlu1 %2328 }
 0x6e5   : > { %v5182_v57 = vpop.eup %5181 }
 0x6e6   : > { %v2342_v61 = vmul.f32 %v5182_v57, %v6244_v46  ;;  %v2305_v62 = vpop.xlane.xlu1 %2304 }
 0x6e7   : > { %5183 = vrcp.f32 %v2305_v62 }
 0x6e8   : > { %4730 = vmatmul.mubr.msk.f32.vlgmr.msra.gmra.mrb[16].mxu1 %vm2365_vm3, %v2342_v61  ;;  %5185 = vrcp.f32 %v2311_v10  ;;  %v4885_v10 = vpack.c.bf16 %v3598_v35, %v3597_v58  ;;  %v5205_v35 = vld [vmem:[#allocation2] sm:$0xff] }
 0x6e9   : > { %4738 = vmatpush3.msra.mxu1 %v6260_v56  ;;  %4739 = vmatprep.mubr.msk.f32.mxu1 %vm5501_vm0, %v5500_v30  ;;  %5187 = vrcp.f32 %v2317_v55  ;;  %v3600_v55 = vld [vmem:[%s5916_s13 + $0x38] sm:$0xff] }
 0x6ea   : > { %4747 = vmatprep.subr.mxu1 %v5500_v30  ;;  %5189 = vrcp.f32 %v2323_v48  ;;  %v4888_v57 = vpack.c.bf16 %v3600_v55, %v3599_v14  ;;  %v3691_v55 = vld [vmem:[%s5918_s0 + $0x8] sm:$0xff] }
 0x6f1   : > { %v5184_v59 = vpop.eup %5183 }
 0x6f2   : > { %v2346_v63 = vmul.f32 %v5184_v59, %v6258_v33  ;;  %v5186_v0 = vpop.eup %5185 }
 0x6f3   : > { %v2350_v46 = vmul.f32 %v5186_v0, %v6223_v43  ;;  %v5188_v56 = vpop.eup %5187 }
 0x6f4   : > { %4740 = vmatmul.mubr.msk.f32.vlgmr.msra.gmra.mrb[18].mxu1 %vm2365_vm3, %v2346_v63  ;;  %v2354_v33 = vmul.f32 %v5188_v56, %v6239_v37  ;;  %v5190_v1 = vpop.eup %5189 }
 0x6f5   : > { %4748 = vmatpush3.msra.mxu1 %v6264_v60  ;;  %4749 = vmatprep.mubr.msk.f32.mxu1 %vm5501_vm0, %v5500_v30  ;;  %v968_v60 = vpop.permute.xlu0 %967  ;;  %v2358_v43 = vmul.f32 %v5190_v1, %v6248_v20  ;;  %v964_v20 = vpop.permute.xlu1 %963  ;;  %v3601_v1 = vld [vmem:[%s5916_s13 + $0x40] sm:$0xff] }
 0x6f6   : > { %4757 = vmatprep.subr.mxu1 %v5500_v30 }
 0x6f8   : > { %4750 = vmatmul.mubr.msk.f32.vlgmr.msra.gmra.mrb[20].mxu1 %vm2365_vm3, %v2350_v46 }
 0x6f9   : > { %4758 = vmatpush3.msra.mxu1 %v962_v31  ;;  %4759 = vmatprep.mubr.msk.f32.mxu1 %vm5501_vm0, %v5500_v30  ;;  %v970_v36 = vpop.permute.xlu1 %969 }
 0x6fa   : > { %4767 = vmatprep.subr.mxu1 %v5500_v30 }
 0x6fc   : > { %4760 = vmatmul.mubr.msk.f32.vlgmr.msra.gmra.mrb[22].mxu1 %vm2365_vm3, %v2354_v33 }
 0x6fd   : > { %4768 = vmatpush3.msra.mxu1 %v968_v60  ;;  %4769 = vmatprep.mubr.msk.f32.mxu1 %vm5501_vm0, %v5500_v30  ;;  %v3602_v60 = vld [vmem:[%s5916_s13 + $0x48] sm:$0xff] }
 0x6fe   : > { %4777 = vmatprep.subr.mxu1 %v5500_v30 }
 0x6ff   : > { %v2308_v2 = vpop.xlane.xlu0 %2307 }
 0x700   : > { %5191 = vrcp.f32 %v2308_v2  ;;  %4770 = vmatmul.mubr.msk.f32.vlgmr.msra.gmra.mrb[24].mxu1 %vm2365_vm3, %v2358_v43  ;;  %v4891_v43 = vpack.c.bf16 %v3602_v60, %v3601_v1  ;;  %v3603_v2 = vld [vmem:[%s5916_s13 + $0x50] sm:$0xff]  ;;  %v3701_v1 = vld [vmem:[%s5918_s0 + $0x58] sm:$0xff] }
 0x701   : > { %4779 = vmatprep.mubr.msk.f32.mxu1 %vm5501_vm0, %v5500_v30  ;;  %v3705_v60 = vld [vmem:[%s5918_s0 + $0x78] sm:$0xff] }
 0x703   : > { %v2314_v37 = vpop.xlane.xlu0 %2313 }
 0x704   : > { %5193 = vrcp.f32 %v2314_v37  ;;  %v3604_v37 = vld [vmem:[%s5916_s13 + $0x58] sm:$0xff] }
 0x705   : > { %5195 = vrcp.f32 %v2329_v24 }
 0x707   : > { %v2320_v3 = vpop.xlane.xlu0 %2319 }
 0x708   : > { %5197 = vrcp.f32 %v2320_v3  ;;  %v4894_v3 = vpack.c.bf16 %v3604_v37, %v3603_v2  ;;  %v4938_v2 = vpack.c.bf16 %v3705_v60, %v3701_v1  ;;  %v3698_v37 = vld [vmem:[%s5918_s0 + $0x40] sm:$0xff]  ;;  %v3736_v1 = vld [vmem:[%s5918_s0 + $0x170] sm:$0xff]  ;;  %v3739_v60 = vld [vmem:[%s5918_s0 + $0x188] sm:$0xff] }
 0x70a   : > { %v5192_v4 = vpop.eup %5191 }
 0x70b   : > { %v2348_v21 = vmul.f32 %v5192_v4, %v6274_v27  ;;  %v2326_v6 = vpop.xlane.xlu0 %2325  ;;  %v3605_v4 = vld [vmem:[%s5916_s13 + $0x60] sm:$0xff] }
 0x70c   : > { %5199 = vrcp.f32 %v2326_v6 }
 0x70d   : > { %4745 = vmatmul.mubr.msk.f32.vlgmr.msra.gmra.mrb[32].mxu0 %vm2365_vm3, %v2348_v21  ;;  %v3606_v21 = vld [vmem:[%s5916_s13 + $0x68] sm:$0xff] }
 0x70e   : > { %v5194_v7 = vpop.eup %5193  ;;  %4753 = vmatpush3.msra.mxu0 %v6295_v19  ;;  %4754 = vmatprep.mubr.msk.f32.mxu0 %vm5501_vm0, %v5500_v30  ;;  %v4897_v6 = vpack.c.bf16 %v3606_v21, %v3605_v4  ;;  %v3700_v4 = vld [vmem:[%s5918_s0 + $0x50] sm:$0xff] }
 0x70f   : > { %v2352_v9 = vmul.f32 %v5194_v7, %v6281_v52  ;;  %v2332_v28 = vpop.xlane.xlu0 %2331  ;;  %4762 = vmatprep.subr.mxu0 %v5500_v30  ;;  %v5196_v45 = vpop.eup %5195 }
 0x710   : > { %5201 = vrcp.f32 %v2332_v28  ;;  %v2362_v32 = vmul.f32 %v5196_v45, %v6254_v53  ;;  %v976_v53 = vpop.permute.xlu1 %975  ;;  %v3607_v28 = vld [vmem:[%s5916_s13 + $0x70] sm:$0xff]  ;;  %v3608_v45 = vld [vmem:[%s5916_s13 + $0x78] sm:$0xff] }
 0x711   : > { %4755 = vmatmul.mubr.msk.f32.vlgmr.msra.gmra.mrb[34].mxu0 %vm2365_vm3, %v2352_v9 }
 0x712   : > { %v5198_v27 = vpop.eup %5197  ;;  %4763 = vmatpush3.msra.mxu0 %v964_v20  ;;  %4764 = vmatprep.mubr.msk.f32.mxu0 %vm5501_vm0, %v5500_v30 }
 0x713   : > { %v2356_v12 = vmul.f32 %v5198_v27, %v6285_v15  ;;  %v974_v13 = vpop.permute.xlu0 %973  ;;  %4772 = vmatprep.subr.mxu0 %v5500_v30  ;;  %v4900_v27 = vpack.c.bf16 %v3608_v45, %v3607_v28  ;;  %v3709_v45 = vld [vmem:[%s5918_s0 + $0x98] sm:$0xff] }
 0x714   : > { %4778 = vmatpush3.msra.mxu1 %v974_v13 }
 0x715   : > { %4765 = vmatmul.mubr.msk.f32.vlgmr.msra.gmra.mrb[36].mxu0 %vm2365_vm3, %v2356_v12  ;;  %4780 = vmatmul.mubr.msk.f32.vlgmr.msra.gmra.mrb[26].mxu1 %vm2365_vm3, %v2362_v32 }
 0x716   : > { %v5200_v52 = vpop.eup %5199  ;;  %4773 = vmatpush3.msra.mxu0 %v970_v36  ;;  %4774 = vmatprep.mubr.msk.f32.mxu0 %vm5501_vm0, %v5500_v30 }
 0x717   : > { %v2360_v16 = vmul.f32 %v5200_v52, %v6289_v17  ;;  %4782 = vmatprep.subr.mxu0 %v5500_v30  ;;  %4878 = vmatprep.subr.bf16.mxu1 %v5499_v29 }
 0x718   : > { %4819 = vmatprep.mubr.msk.f32.mxu1 %vm5501_vm0, %v5500_v30  ;;  %4880 = vmatpush3.bf16.msra.mxu1 %v4879_v40 }
 0x719   : > { %4775 = vmatmul.mubr.msk.f32.vlgmr.msra.gmra.mrb[38].mxu0 %vm2365_vm3, %v2360_v16  ;;  %4881 = vmatprep.subr.bf16.mxu1 %v5499_v29 }
 0x71a   : > { %v5202_v15 = vpop.eup %5201  ;;  %4783 = vmatpush3.msra.mxu0 %v976_v53  ;;  %4784 = vmatprep.mubr.msk.f32.mxu0 %vm5501_vm0, %v5500_v30 }
 0x71b   : > { %v2364_v39 = vmul.f32 %v5202_v15, %v6293_v18 }
 0x71c   : > { %4883 = vmatpush3.bf16.msra.mxu1 %v4882_v47 }
 0x71d   : > { %4785 = vmatmul.mubr.msk.f32.vlgmr.msra.gmra.mrb[40].mxu0 %vm2365_vm3, %v2364_v39  ;;  %4884 = vmatprep.subr.bf16.mxu1 %v5499_v29 }
 0x71e   : > { %3840 = vmatprep.mubr.f32.mxu0 %v5500_v30 }
 0x720   : > { %4886 = vmatpush3.bf16.msra.mxu1 %v4885_v10 }
 0x721   : > { %4887 = vmatprep.subr.bf16.mxu1 %v5499_v29 }
 0x724   : > { %4889 = vmatpush3.bf16.msra.mxu1 %v4888_v57  ;;  %v3697_v57 = vld [vmem:[%s5918_s0 + $0x38] sm:$0xff] }
 0x725   : > { %4890 = vmatprep.subr.bf16.mxu1 %v5499_v29 }
 0x728   : > { %4892 = vmatpush3.bf16.msra.mxu1 %v4891_v43 }
 0x729   : > { %4893 = vmatprep.subr.bf16.mxu1 %v5499_v29 }
 0x72c   : > { %4895 = vmatpush3.bf16.msra.mxu1 %v4894_v3  ;;  %v3702_v3 = vld [vmem:[%s5918_s0 + $0x60] sm:$0xff] }
 0x72d   : > { %4896 = vmatprep.subr.bf16.mxu1 %v5499_v29  ;;  %v4908_v21 = vpack.c.bf16 %v3702_v3, %v3698_v37  ;;  %v3741_v37 = vld [vmem:[%s5918_s0 + $0x198] sm:$0xff] }
 0x72e   : > { %v3745_v3 = vld [vmem:[%s5918_s0 + $0x1b8] sm:$0xff] }
 0x730   : > { %4898 = vmatpush3.bf16.msra.mxu1 %v4897_v6  ;;  %v3704_v6 = vld [vmem:[%s5918_s0 + $0x70] sm:$0xff] }
 0x731   : > { %4899 = vmatprep.subr.bf16.mxu1 %v5499_v29 }
 0x734   : > { %4901 = vmatpush3.bf16.msra.mxu1 %v4900_v27  ;;  %v3713_v27 = vld [vmem:[%s5918_s0 + $0xb8] sm:$0xff] }
 0x766   : > { %v6383_v17 = vpop.f32.mrb[12].mxu1 }
 0x767   : > { %v4711_v54 = vpop.f32.mrb[13].mxu1 }
 0x787   : > { %v6385_v19 = vpop.f32.mrb[26].mxu0 }
 0x788   : > { %v3536_v22 = vcombine.low %v6383_v17, %v6385_v19  ;;  %v4716_v23 = vpop.f32.mrb[27].mxu0 }
 0x79b   : > { %v2581_v25 = vpop.f32.mrb[14].mxu1 }
 0x79c   : > { %v4721_v18 = vpop.f32.mrb[15].mxu1 }
 0x79f   : > { %v2654_v26 = vpop.f32.mrb[28].mxu0 }
 0x7a0   : > { %v3540_v31 = vcombine.low %v2581_v25, %v2654_v26  ;;  %v4726_v34 = vpop.f32.mrb[29].mxu0 }
 0x7a2   : > { %3541 = vrot.lane.b32.xlu0 %v3540_v31, %s5508_s20 }
 0x7a7   : > { %v2800_v38 = vpop.f32.mrb[30].mxu0 }
 0x7a8   : > { %v4736_v5 = vpop.f32.mrb[31].mxu0 }
 0x7bb   : > { %v2727_v11 = vpop.f32.mrb[16].mxu1 }
 0x7bc   : > { %v3546_v48 = vcombine.low %v2727_v11, %v2800_v38  ;;  %v4731_v24 = vpop.f32.mrb[17].mxu1  ;;  %v3695_v11 = vld [vmem:[%s5918_s0 + $0x28] sm:$0xff] }
 0x7bd   : > { %v4902_v24 = vpack.c.bf16 %v3695_v11, %v3691_v55  ;;  %v3724_v11 = vld [vmem:[%s5918_s0 + $0x110] sm:$0xff] }
 0x7be   : > { %3547 = vrot.lane.b32.xlu1 %v3546_v48, %s5507_s17  ;;  %v3693_v48 = vld [vmem:[%s5918_s0 + $0x18] sm:$0xff] }
 0x7bf   : > { %4903 = vmatprep.subr.bf16.mxu0 %v4902_v24 }
 0x7c7   : > { %v2873_v61 = vpop.f32.mrb[18].mxu1 }
 0x7c8   : > { %v4741_v62 = vpop.f32.mrb[19].mxu1 }
 0x7c9   : > { %v4934_v62 = vpack.c.bf16 %v3697_v57, %v3693_v48  ;;  %v3728_v48 = vld [vmem:[%s5918_s0 + $0x130] sm:$0xff]  ;;  %v3731_v57 = vld [vmem:[%s5918_s0 + $0x148] sm:$0xff] }
 0x7ca   : > { %v4952_v24 = vpack.c.bf16 %v3728_v48, %v3724_v11  ;;  %v3924_v11 = vld [vmem:[%s5920_s28 + $0x10] sm:$0xff]  ;;  %v3925_v48 = vld [vmem:[%s5920_s28 + $0x18] sm:$0xff] }
 0x7cb   : > { %v3019_v59 = vpop.f32.mrb[20].mxu1  ;;  %4935 = vmatprep.subr.bf16.mxu1 %v4934_v62 }
 0x7cc   : > { %v4751_v63 = vpop.f32.mrb[21].mxu1 }
 0x7cd   : > { %v3692_v63 = vld [vmem:[%s5918_s0 + $0x10] sm:$0xff] }
 0x7cf   : > { %v3165_v0 = vpop.f32.mrb[22].mxu1 }
 0x7d0   : > { %v4761_v46 = vpop.f32.mrb[23].mxu1 }
 0x7d1   : > { %v3699_v46 = vld [vmem:[%s5918_s0 + $0x48] sm:$0xff] }
 0x7d3   : > { %v3311_v56 = vpop.f32.mrb[24].mxu1 }
 0x7d4   : > { %v4771_v33 = vpop.f32.mrb[25].mxu1 }
 0x7d5   : > { %v3703_v33 = vld [vmem:[%s5918_s0 + $0x68] sm:$0xff] }
 0x7d6   : > { %v4906_v43 = vpack.c.bf16 %v3703_v33, %v3699_v46  ;;  %v3732_v33 = vld [vmem:[%s5918_s0 + $0x150] sm:$0xff] }
 0x7e0   : > { %v2946_v20 = vpop.f32.mrb[32].mxu0 }
 0x7e1   : > { %v3552_v7 = vcombine.low %v2873_v61, %v2946_v20  ;;  %v4746_v9 = vpop.f32.mrb[33].mxu0  ;;  %v3690_v61 = vld [vmem:[%s5918_s0] sm:$0xff]  ;;  %v3707_v20 = vld [vmem:[%s5918_s0 + $0x88] sm:$0xff] }
 0x7e2   : > { %v4940_v9 = vpack.c.bf16 %v3704_v6, %v3700_v4  ;;  %v3738_v6 = vld [vmem:[%s5918_s0 + $0x180] sm:$0xff] }
 0x7e3   : > { %3553 = vrot.lane.b32.xlu0 %v3552_v7, %s5506_s15  ;;  %v3711_v7 = vld [vmem:[%s5918_s0 + $0xa8] sm:$0xff] }
 0x7e4   : > { %v3092_v32 = vpop.f32.mrb[34].mxu0  ;;  %v4910_v28 = vpack.c.bf16 %v3711_v7, %v3707_v20  ;;  %v3742_v20 = vld [vmem:[%s5918_s0 + $0x1a0] sm:$0xff]  ;;  %v3740_v7 = vld [vmem:[%s5918_s0 + $0x190] sm:$0xff] }
 0x7e5   : > { %v3558_v36 = vcombine.low %v3019_v59, %v3092_v32  ;;  %v4756_v12 = vpop.f32.mrb[35].mxu0  ;;  %v3706_v32 = vld [vmem:[%s5918_s0 + $0x80] sm:$0xff] }
 0x7e6   : > { %v3710_v12 = vld [vmem:[%s5918_s0 + $0xa0] sm:$0xff] }
 0x7e7   : > { %3559 = vrot.lane.b32.xlu1 %v3558_v36, %s5505_s11  ;;  %v4942_v36 = vpack.c.bf16 %v3713_v27, %v3709_v45  ;;  %v3747_v45 = vld [vmem:[%s5918_s0 + $0x1c8] sm:$0xff] }
 0x7e8   : > { %v3238_v13 = vpop.f32.mrb[36].mxu0  ;;  %v3457_v52 = vpop.f32.mrb[26].mxu1  ;;  %v3751_v27 = vld [vmem:[%s5918_s0 + $0x1e8] sm:$0xff] }
 0x7e9   : > { %v3564_v16 = vcombine.low %v3165_v0, %v3238_v13  ;;  %v4766_v53 = vpop.f32.mrb[37].mxu0  ;;  %v4781_v15 = vpop.f32.mrb[27].mxu1  ;;  %v3696_v0 = vld [vmem:[%s5918_s0 + $0x30] sm:$0xff] }
 0x7ea   : > { %v3708_v13 = vld [vmem:[%s5918_s0 + $0x90] sm:$0xff]  ;;  %v3715_v53 = vld [vmem:[%s5918_s0 + $0xc8] sm:$0xff] }
 0x7eb   : > { %3565 = vrot.lane.b32.xlu0 %v3564_v16, %s5504_s2  ;;  %v4912_v16 = vpack.c.bf16 %v3710_v12, %v3706_v32  ;;  %v3719_v15 = vld [vmem:[%s5918_s0 + $0xe8] sm:$0xff]  ;;  %v3749_v12 = vld [vmem:[%s5918_s0 + $0x1d8] sm:$0xff] }
 0x7ec   : > { %v3384_v39 = vpop.f32.mrb[38].mxu0 }
 0x7ed   : > { %v3570_v29 = vcombine.low %v3311_v56, %v3384_v39  ;;  %v4776_v54 = vpop.f32.mrb[39].mxu0  ;;  %v4936_v56 = vpack.c.bf16 %v3696_v0, %v3692_v63  ;;  %v3717_v39 = vld [vmem:[%s5918_s0 + $0xd8] sm:$0xff]  ;;  %v3730_v63 = vld [vmem:[%s5918_s0 + $0x140] sm:$0xff] }
 0x7ee   : > { %v4914_v54 = vpack.c.bf16 %v3719_v15, %v3715_v53  ;;  %v3734_v0 = vld [vmem:[%s5918_s0 + $0x160] sm:$0xff]  ;;  %v3748_v15 = vld [vmem:[%s5918_s0 + $0x1d0] sm:$0xff] }
 0x7ef   : > { %3571 = vrot.lane.b32.xlu1 %v3570_v29, %s5503_s4  ;;  %v3750_v53 = vld [vmem:[%s5918_s0 + $0x1e0] sm:$0xff] }
 0x7f0   : > { %v3530_v23 = vpop.f32.mrb[40].mxu0 }
 0x7f1   : > { %v3576_v25 = vcombine.low %v3457_v52, %v3530_v23  ;;  %v4786_v18 = vpop.f32.mrb[41].mxu0  ;;  %v3712_v52 = vld [vmem:[%s5918_s0 + $0xb0] sm:$0xff]  ;;  %v3721_v23 = vld [vmem:[%s5918_s0 + $0xf8] sm:$0xff] }
 0x7f2   : > { %v4944_v29 = vpack.c.bf16 %v3712_v52, %v3708_v13  ;;  %v3718_v18 = vld [vmem:[%s5918_s0 + $0xe0] sm:$0xff]  ;;  %v3753_v13 = vld [vmem:[%s5918_s0 + $0x1f8] sm:$0xff] }
 0x7f3   : > { %3577 = vrot.lane.b32.xlu0 %v3576_v25, %s5502_s7  ;;  %v3714_v25 = vld [vmem:[%s5918_s0 + $0xc0] sm:$0xff] }
 0x7f4   : > { %v3746_v52 = vld [vmem:[%s5918_s0 + $0x1c0] sm:$0xff] }
 0x814   : > { %v3542_v26 = vpop.permute.xlu0 %3541 }
 0x815   : > { %v3580_v5 = vsel %vm987_vm1, %v3536_v22, %v3542_v26  ;;  %v4946_v26 = vpack.c.bf16 %v3721_v23, %v3717_v39  ;;  %v3752_v39 = vld [vmem:[%s5918_s0 + $0x1f0] sm:$0xff]  ;;  %v3938_v23 = vld [vmem:[%s5920_s28 + $0x80] sm:$0xff] }
 0x830   : > { %v3548_v31 = vpop.permute.xlu1 %3547 }
 0x831   : > { %v3582_v49 = vsel %vm3581_vm4, %v3580_v5, %v3548_v31  ;;  %v3716_v31 = vld [vmem:[%s5918_s0 + $0xd0] sm:$0xff] }
 0x855   : > { %v3554_v34 = vpop.permute.xlu0 %3553 }
 0x856   : > { %v3584_v50 = vsel %vm3583_vm5, %v3582_v49, %v3554_v34  ;;  %v3720_v34 = vld [vmem:[%s5918_s0 + $0xf0] sm:$0xff] }
 0x857   : > { %v4948_v5 = vpack.c.bf16 %v3720_v34, %v3716_v31  ;;  %v3971_v31 = vld [vmem:[%s5920_s28 + $0x188] sm:$0xff] }
 0x859   : > { %v3560_v38 = vpop.permute.xlu1 %3559 }
 0x85a   : > { %v3586_v8 = vsel %vm3585_vm6, %v3584_v50, %v3560_v38  ;;  %v4916_v38 = vpack.c.bf16 %v3718_v18, %v3714_v25  ;;  %v3939_v25 = vld [vmem:[%s5920_s28 + $0x88] sm:$0xff]  ;;  %v3970_v18 = vld [vmem:[%s5920_s28 + $0x180] sm:$0xff] }
 0x85b   : > { %v4998_v34 = vpack.c.bf16 %v3971_v31, %v3970_v18  ;;  %v3963_v18 = vld [vmem:[%s5920_s28 + $0x148] sm:$0xff]  ;;  %v3949_v31 = vld [vmem:[%s5920_s28 + $0xd8] sm:$0xff] }
 0x85d   : > { %v3566_v51 = vpop.permute.xlu0 %3565 }
 0x85e   : > { %v3588_v47 = vsel %vm3587_vm7, %v3586_v8, %v3566_v51  ;;  %v3723_v8 = vld [vmem:[%s5918_s0 + $0x108] sm:$0xff] }
 0x861   : > { %v3572_v40 = vpop.permute.xlu1 %3571 }
 0x862   : > { %v3590_v58 = vsel %vm3589_vm8, %v3588_v47, %v3572_v40  ;;  %v3727_v47 = vld [vmem:[%s5918_s0 + $0x128] sm:$0xff] }
 0x865   : > { %v3578_v17 = vpop.permute.xlu0 %3577 }
 0x866   : > { %v3592_v19 = vsel %vm3591_vm9, %v3590_v58, %v3578_v17  ;;  %v3725_v58 = vld [vmem:[%s5918_s0 + $0x118] sm:$0xff]  ;;  %v4918_v17 = vpack.c.bf16 %v3727_v47, %v3723_v8  ;;  %v3954_v8 = vld [vmem:[%s5920_s28 + $0x100] sm:$0xff]  ;;  %v3955_v47 = vld [vmem:[%s5920_s28 + $0x108] sm:$0xff] }
 0x867   : > { %4820 = vmatmul.mubr.f32.vlgmr.msra.gmra.mrb[28].mxu1 %v3592_v19  ;;  %v3729_v19 = vld [vmem:[%s5918_s0 + $0x138] sm:$0xff] }
 0x868   : > { %3911 = vmatprep.mubr.f32.mxu1 %v5500_v30  ;;  %v3694_v30 = vld [vmem:[%s5918_s0 + $0x20] sm:$0xff]  ;;  %4937 = vmatpush1.bf16.msra.mxu1 %v4936_v56  ;;  %v4924_v56 = vpack.c.bf16 %v3734_v0, %v3730_v63  ;;  %v3943_v63 = vld [vmem:[%s5920_s28 + $0xa8] sm:$0xff] }
 0x869   : > { %v4904_v59 = vpack.c.bf16 %v3694_v30, %v3690_v61  ;;  %4939 = vmatprep.subr.bf16.mxu1 %v4938_v2  ;;  %v3735_v61 = vld [vmem:[%s5918_s0 + $0x168] sm:$0xff]  ;;  %v3733_v30 = vld [vmem:[%s5918_s0 + $0x158] sm:$0xff]  ;;  %v3974_v0 = vld [vmem:[%s5920_s28 + $0x1a0] sm:$0xff] }
 0x86a   : > { %v4922_v62 = vpack.c.bf16 %v3735_v61, %v3731_v57  ;;  %v3743_v2 = vld [vmem:[%s5918_s0 + $0x1a8] sm:$0xff] }
 0x86b   : > { %4905 = vmatpush1.bf16.msra.mxu0 %v4904_v59  ;;  %v3737_v59 = vld [vmem:[%s5918_s0 + $0x178] sm:$0xff]  ;;  %v4926_v4 = vpack.c.bf16 %v3743_v2, %v3739_v60  ;;  %v3958_v2 = vld [vmem:[%s5920_s28 + $0x120] sm:$0xff] }
 0x86c   : > { %4907 = vmatprep.subr.bf16.mxu0 %v4906_v43  ;;  %4941 = vmatpush1.bf16.msra.mxu1 %v4940_v9  ;;  %v4954_v46 = vpack.c.bf16 %v3737_v59, %v3733_v30  ;;  %v4956_v43 = vpack.c.bf16 %v3736_v1, %v3732_v33  ;;  %v4928_v9 = vpack.c.bf16 %v3742_v20, %v3738_v6  ;;  %v3956_v30 = vld [vmem:[%s5920_s28 + $0x110] sm:$0xff]  ;;  %v3942_v59 = vld [vmem:[%s5920_s28 + $0xa0] sm:$0xff]  ;;  %v3927_v1 = vld [vmem:[%s5920_s28 + $0x28] sm:$0xff] }
 0x86d   : > { %4943 = vmatprep.subr.bf16.mxu1 %v4942_v36  ;;  %v4930_v36 = vpack.c.bf16 %v3751_v27, %v3747_v45  ;;  %v3926_v33 = vld [vmem:[%s5920_s28 + $0x20] sm:$0xff]  ;;  %v4974_v60 = vpack.c.bf16 %v3943_v63, %v3942_v59  ;;  %v3977_v6 = vld [vmem:[%s5920_s28 + $0x1b8] sm:$0xff]  ;;  %v3967_v59 = vld [vmem:[%s5920_s28 + $0x168] sm:$0xff] }
 0x86e   : > { %v4976_v20 = vpack.c.bf16 %v3927_v1, %v3926_v33  ;;  %v3985_v33 = vld [vmem:[%s5920_s28 + $0x1f8] sm:$0xff]  ;;  %v3936_v1 = vld [vmem:[%s5920_s28 + $0x70] sm:$0xff] }
 0x86f   : > { %4909 = vmatpush1.bf16.msra.mxu0 %v4908_v21  ;;  %v4958_v21 = vpack.c.bf16 %v3745_v3, %v3741_v37  ;;  %v3959_v37 = vld [vmem:[%s5920_s28 + $0x128] sm:$0xff]  ;;  %v3944_v3 = vld [vmem:[%s5920_s28 + $0xb0] sm:$0xff] }
 0x870   : > { %4911 = vmatprep.subr.bf16.mxu0 %v4910_v28  ;;  %4945 = vmatpush1.bf16.msra.mxu1 %v4944_v29  ;;  %v3744_v28 = vld [vmem:[%s5918_s0 + $0x1b0] sm:$0xff]  ;;  %v4932_v29 = vpack.c.bf16 %v3750_v53, %v3746_v52  ;;  %v3978_v52 = vld [vmem:[%s5920_s28 + $0x1c0] sm:$0xff] }
 0x871   : > { %4947 = vmatprep.subr.bf16.mxu1 %v4946_v26  ;;  %v4960_v32 = vpack.c.bf16 %v3744_v28, %v3740_v7  ;;  %v4966_v26 = vpack.c.bf16 %v3939_v25, %v3938_v23  ;;  %v5008_v7 = vpack.c.bf16 %v3959_v37, %v3958_v2  ;;  %v3929_v28 = vld [vmem:[%s5920_s28 + $0x38] sm:$0xff]  ;;  %v3962_v25 = vld [vmem:[%s5920_s28 + $0x140] sm:$0xff]  ;;  %v3968_v37 = vld [vmem:[%s5920_s28 + $0x170] sm:$0xff] }
 0x873   : > { %4913 = vmatpush1.bf16.msra.mxu0 %v4912_v16  ;;  %v4962_v16 = vpack.c.bf16 %v3753_v13, %v3749_v12  ;;  %v3946_v12 = vld [vmem:[%s5920_s28 + $0xc0] sm:$0xff]  ;;  %v3947_v13 = vld [vmem:[%s5920_s28 + $0xc8] sm:$0xff] }
 0x874   : > { %4915 = vmatprep.subr.bf16.mxu0 %v4914_v54  ;;  %4949 = vmatpush1.bf16.msra.mxu1 %v4948_v5  ;;  %v4964_v54 = vpack.c.bf16 %v3752_v39, %v3748_v15  ;;  %v3930_v39 = vld [vmem:[%s5920_s28 + $0x40] sm:$0xff] }
 0x877   : > { %4917 = vmatpush1.bf16.msra.mxu0 %v4916_v38 }
 0x878   : > { %4919 = vmatprep.subr.bf16.mxu0 %v4918_v17  ;;  %v3941_v17 = vld [vmem:[%s5920_s28 + $0x98] sm:$0xff] }
 0x93a   : > { %v3675_v22 = vpop.f32.mrb[28].mxu1 }
 0x93b   : > { %v6424_v10 = vadd.f32 %v5205_v35, %v3675_v22  ;;  %v4821_v14 = vpop.f32.mrb[29].mxu1  ;;  %v3722_v22 = vld [vmem:[%s5918_s0 + $0x100] sm:$0xff] }
 0x93c   : > { %v3726_v35 = vld [vmem:[%s5918_s0 + $0x120] sm:$0xff]  ;;  %v4950_v14 = vpack.c.bf16 %v3729_v19, %v3725_v58  ;;  %v3940_v58 = vld [vmem:[%s5920_s28 + $0x90] sm:$0xff] }
 0x93d   : > { %3679 = vadd.xlane.f32.xlu1 %v6424_v10  ;;  %v4920_v55 = vpack.c.bf16 %v3726_v35, %v3722_v22  ;;  %v3972_v19 = vld [vmem:[%s5920_s28 + $0x190] sm:$0xff]  ;;  %v3973_v22 = vld [vmem:[%s5920_s28 + $0x198] sm:$0xff]  ;;  %v4970_v57 = vpack.c.bf16 %v3941_v17, %v3940_v58 }
 0x93e   : > { %4951 = vmatprep.subr.bf16.mxu1 %v4950_v14  ;;  %v5002_v61 = vpack.c.bf16 %v3973_v22, %v3972_v19  ;;  %v3964_v58 = vld [vmem:[%s5920_s28 + $0x150] sm:$0xff]  ;;  %v3965_v17 = vld [vmem:[%s5920_s28 + $0x158] sm:$0xff]  ;;  %v3950_v19 = vld [vmem:[%s5920_s28 + $0xe0] sm:$0xff] }
 0x93f   : > { %4921 = vmatpush1.bf16.msra.mxu0 %v4920_v55  ;;  %4953 = vmatpush1.bf16.msra.mxu1 %v4952_v24  ;;  %v5000_v55 = vpack.c.bf16 %v3955_v47, %v3954_v8  ;;  %v3951_v22 = vld [vmem:[%s5920_s28 + $0xe8] sm:$0xff] }
 0x940   : > { %4923 = vmatprep.subr.bf16.mxu0 %v4922_v62  ;;  %4955 = vmatprep.subr.bf16.mxu1 %v4954_v46  ;;  %v3957_v62 = vld [vmem:[%s5920_s28 + $0x118] sm:$0xff]  ;;  %v3975_v46 = vld [vmem:[%s5920_s28 + $0x1a8] sm:$0xff] }
 0x943   : > { %4925 = vmatpush1.bf16.msra.mxu0 %v4924_v56  ;;  %4957 = vmatpush1.bf16.msra.mxu1 %v4956_v43  ;;  %v5004_v56 = vpack.c.bf16 %v3957_v62, %v3956_v30  ;;  %v5006_v43 = vpack.c.bf16 %v3975_v46, %v3974_v0  ;;  %v3966_v30 = vld [vmem:[%s5920_s28 + $0x160] sm:$0xff]  ;;  %v3952_v0 = vld [vmem:[%s5920_s28 + $0xf0] sm:$0xff]  ;;  %v3953_v46 = vld [vmem:[%s5920_s28 + $0xf8] sm:$0xff] }
 0x944   : > { %4927 = vmatprep.subr.bf16.mxu0 %v4926_v4  ;;  %4959 = vmatprep.subr.bf16.mxu1 %v4958_v21  ;;  %v3945_v4 = vld [vmem:[%s5920_s28 + $0xb8] sm:$0xff]  ;;  %v3976_v21 = vld [vmem:[%s5920_s28 + $0x1b0] sm:$0xff]  ;;  %v5024_v63 = vpack.c.bf16 %v3967_v59, %v3966_v30 }
 0x945   : > { %v4978_v45 = vpack.c.bf16 %v3945_v4, %v3944_v3  ;;  %v5010_v27 = vpack.c.bf16 %v3977_v6, %v3976_v21  ;;  %v3969_v3 = vld [vmem:[%s5920_s28 + $0x178] sm:$0xff]  ;;  %v3766_v21 = vsub.s32 2, %v5992_v41  ;;  %v3754_v6 = vld [vmem:[%s5908_s24] sm:$0xf] }
 0x946   : > { %v5028_v4 = vpack.c.bf16 %v3969_v3, %v3968_v37 }
 0x947   : > { %4929 = vmatpush1.bf16.msra.mxu0 %v4928_v9  ;;  %4961 = vmatpush1.bf16.msra.mxu1 %v4960_v32  ;;  %v3928_v9 = vld [vmem:[%s5920_s28 + $0x30] sm:$0xff] }
 0x948   : > { %4931 = vmatprep.subr.bf16.mxu0 %v4930_v36  ;;  %4963 = vmatprep.subr.bf16.mxu1 %v4962_v16  ;;  %v3960_v32 = vld [vmem:[%s5920_s28 + $0x130] sm:$0xff]  ;;  %v3961_v36 = vld [vmem:[%s5920_s28 + $0x138] sm:$0xff]  ;;  %v3979_v16 = vld [vmem:[%s5920_s28 + $0x1c8] sm:$0xff]  ;;  %v4980_v53 = vpack.c.bf16 %v3929_v28, %v3928_v9  ;;  %v3767_v9 = vrot.slane %v3754_v6, %v3766_v21  ;;  %v3763_v28 = vrot.slane %v3754_v6, %v809_v44 }
 0x949   : > { %v5012_v15 = vpack.c.bf16 %v3961_v36, %v3960_v32  ;;  %v5014_v23 = vpack.c.bf16 %v3979_v16, %v3978_v52  ;;  %v4414_v44 = vld [vmem:[%s627_s23] ss:$0 sm:$0xff] }
 0x94b   : > { %4933 = vmatpush1.bf16.msra.mxu0 %v4932_v29  ;;  %4965 = vmatpush1.bf16.msra.mxu1 %v4964_v54  ;;  %v3931_v29 = vld [vmem:[%s5920_s28 + $0x48] sm:$0xff]  ;;  %v4982_v54 = vpack.c.bf16 %v3947_v13, %v3946_v12 }
 0x94c   : > { %4967 = vmatprep.subr.bf16.mxu0 %v4966_v26  ;;  %4999 = vmatprep.subr.bf16.mxu1 %v4998_v34  ;;  %v3948_v26 = vld [vmem:[%s5920_s28 + $0xd0] sm:$0xff] }
 0x94d   : > { %v3980_v34 = vld [vmem:[%s5920_s28 + $0x1d0] sm:$0xff]  ;;  %v4986_v8 = vpack.c.bf16 %v3949_v31, %v3948_v26 }
 0x9ca   : > { %v3680_v49 = vpop.xlane.xlu1 %3679 }
 0x9cb   : > { %v3681_v51 = vmul.f32 0.0078125, %v3680_v49 }
 0x9cd   : > { %v6460_v50 = vsub.f32 %v6424_v10, %v3681_v51  ;;  %v3922_v51 = vld [vmem:[%s5920_s28] sm:$0xff] }
 0x9cf   : > { %v3683_v40 = vmul.f32 %v6460_v50, %v6460_v50 }
 0x9d1   : > { %3684 = vadd.xlane.f32.xlu0 %v3683_v40  ;;  %v3923_v40 = vld [vmem:[%s5920_s28 + $0x8] sm:$0xff] }
 0x9d2   : > { %v4968_v14 = vpack.c.bf16 %v3923_v40, %v3922_v51  ;;  %v3932_v51 = vld [vmem:[%s5920_s28 + $0x50] sm:$0xff]  ;;  %v3933_v40 = vld [vmem:[%s5920_s28 + $0x58] sm:$0xff] }
 0xa5e   : > { %v3685_v38 = vpop.xlane.xlu0 %3684 }
 0xa5f   : > { %v3686_v5 = vmul.f32 0.0078125, %v3685_v38  ;;  %v3981_v38 = vld [vmem:[%s5920_s28 + $0x1d8] sm:$0xff] }
 0xa60   : > { %v5018_v47 = vpack.c.bf16 %v3981_v38, %v3980_v34 }
 0xa61   : > { %v3687_v49 = vadd.f32 1e-05, %v3686_v5  ;;  %v4984_v5 = vpack.c.bf16 %v3931_v29, %v3930_v39 }
 0xa63   : > { %5203 = vrsqrt.f32 %v3687_v49  ;;  %v5016_v49 = vpack.c.bf16 %v3963_v18, %v3962_v25 }
 0xa6d   : > { %v5204_v35 = vpop.eup %5203 }
 0xa6e   : > { %v3689_v24 = vmul.f32 %v5204_v35, %v6460_v50  ;;  %v4972_v50 = vpack.c.bf16 %v3925_v48, %v3924_v11  ;;  %v3982_v35 = vld [vmem:[%s5920_s28 + $0x1e0] sm:$0xff]  ;;  %v5020_v11 = vpack.c.bf16 %v3965_v17, %v3964_v58  ;;  %v4990_v48 = vpack.c.bf16 %v3951_v22, %v3950_v19 }
 0xa70   : > { %3841 = vmatmul.mubr.f32.vlgmr.msra.gmra.mrb[42].mxu0 %v3689_v24  ;;  %3912 = vmatmul.mubr.f32.vlgmr.msra.gmra.mrb[30].mxu1 %v3689_v24 }
 0xa71   : > { %4969 = vmatpush3.bf16.msra.mxu0 %v4968_v14  ;;  %5001 = vmatpush3.bf16.msra.mxu1 %v5000_v55  ;;  %v3983_v14 = vld [vmem:[%s5920_s28 + $0x1e8] sm:$0xff]  ;;  %v4988_v55 = vpack.c.bf16 %v3933_v40, %v3932_v51 }
 0xa72   : > { %4971 = vmatprep.subr.bf16.mxu0 %v4970_v57  ;;  %5003 = vmatprep.subr.bf16.mxu1 %v5002_v61  ;;  %v5022_v24 = vpack.c.bf16 %v3983_v14, %v3982_v35  ;;  %v3934_v57 = vld [vmem:[%s5920_s28 + $0x60] sm:$0xff]  ;;  %v3935_v61 = vld [vmem:[%s5920_s28 + $0x68] sm:$0xff] }
 0xa73   : > { %v4992_v62 = vpack.c.bf16 %v3935_v61, %v3934_v57 }
 0xa75   : > { %4973 = vmatpush3.bf16.msra.mxu0 %v4972_v50  ;;  %5005 = vmatpush3.bf16.msra.mxu1 %v5004_v56  ;;  %v3984_v50 = vld [vmem:[%s5920_s28 + $0x1f0] sm:$0xff]  ;;  %v4994_v56 = vpack.c.bf16 %v3953_v46, %v3952_v0 }
 0xa76   : > { %4975 = vmatprep.subr.bf16.mxu0 %v4974_v60  ;;  %5007 = vmatprep.subr.bf16.mxu1 %v5006_v43  ;;  %v3937_v60 = vld [vmem:[%s5920_s28 + $0x78] sm:$0xff]  ;;  %v5026_v43 = vpack.c.bf16 %v3985_v33, %v3984_v50 }
 0xa77   : > { %v4996_v2 = vpack.c.bf16 %v3937_v60, %v3936_v1 }
 0xa79   : > { %4977 = vmatpush3.bf16.msra.mxu0 %v4976_v20  ;;  %5009 = vmatpush3.bf16.msra.mxu1 %v5008_v7  ;;  %v3770_v20 = vsub.s32 3, %v5992_v41  ;;  %v3759_v7 = vrot.slane %v3754_v6, %v805_v42 }
 0xa7a   : > { %4979 = vmatprep.subr.bf16.mxu0 %v4978_v45  ;;  %5011 = vmatprep.subr.bf16.mxu1 %v5010_v27 }
 0xa7b   : > { %v3771_v45 = vrot.slane %v3754_v6, %v3770_v20 }
 0xa7d   : > { %4981 = vmatpush3.bf16.msra.mxu0 %v4980_v53  ;;  %5013 = vmatpush3.bf16.msra.mxu1 %v5012_v15 }
 0xa7e   : > { %4983 = vmatprep.subr.bf16.mxu0 %v4982_v54  ;;  %5015 = vmatprep.subr.bf16.mxu1 %v5014_v23 }
 0xa81   : > { %4985 = vmatpush3.bf16.msra.mxu0 %v4984_v5  ;;  %5017 = vmatpush3.bf16.msra.mxu1 %v5016_v49 }
 0xa82   : > { %4987 = vmatprep.subr.bf16.mxu0 %v4986_v8  ;;  %5019 = vmatprep.subr.bf16.mxu1 %v5018_v47 }
 0xa85   : > { %4989 = vmatpush3.bf16.msra.mxu0 %v4988_v55  ;;  %5021 = vmatpush3.bf16.msra.mxu1 %v5020_v11 }
 0xa86   : > { %4991 = vmatprep.subr.bf16.mxu0 %v4990_v48  ;;  %5023 = vmatprep.subr.bf16.mxu1 %v5022_v24 }
 0xa89   : > { %4993 = vmatpush3.bf16.msra.mxu0 %v4992_v62  ;;  %5025 = vmatpush3.bf16.msra.mxu1 %v5024_v63 }
 0xa8a   : > { %4995 = vmatprep.subr.bf16.mxu0 %v4994_v56  ;;  %5027 = vmatprep.subr.bf16.mxu1 %v5026_v43 }
 0xa8d   : > { %4997 = vmatpush3.bf16.msra.mxu0 %v4996_v2  ;;  %5029 = vmatpush3.bf16.msra.mxu1 %v5028_v4 }
 0xb43   : > { %v3842_v27 = vpop.f32.mrb[42].mxu0  ;;  %v3913_v32 = vpop.f32.mrb[30].mxu1 }
 0xb44   : > { %v3843_v36 = vadd.f32 %v3842_v27, %v3759_v7  ;;  %v3914_v12 = vadd.f32 %v3913_v32, %v3767_v9  ;;  %v3844_v13 = vpop.f32.mrb[43].mxu0  ;;  %v3915_v52 = vpop.f32.mrb[31].mxu1 }
 0xb45   : > { %v3845_v16 = vadd.f32 %v3844_v13, %v3763_v28  ;;  %v3916_v53 = vadd.f32 %v3915_v52, %v3771_v45 }
 0xb46   : > { %v3918_v29 = vmax.f32 %v3843_v36, 0.0  ;;  %v3920_v54 = vmax.f32 %v3914_v12, 0.0 }
 0xb47   : > { %v3919_v15 = vmax.f32 %v3845_v16, 0.0  ;;  %v3921_v39 = vmax.f32 %v3916_v53, 0.0 }
 0xb49   : > { %4057 = vmatprep.mubr.f32.mxu0 %v3919_v15  ;;  %4127 = vmatprep.mubr.f32.mxu1 %v3921_v39 }
 0xb4a   : > { %4058 = vmatmul.mubr.f32.vlgmr.msra.gmra.mrb[44].mxu0 %v3918_v29  ;;  %4128 = vmatmul.mubr.f32.vlgmr.msra.gmra.mrb[32].mxu1 %v3920_v54 }
 0xc1d   : > { %v4554_v41 = vpop.f32.mrb[44].mxu0  ;;  %v4589_v42 = vpop.f32.mrb[32].mxu1 }
 0xc1e   : > { %v4555_v23 = vpop.f32.mrb[45].mxu0  ;;  %v4590_v25 = vpop.f32.mrb[33].mxu1 }
 0xc1f   : > { %v4556_v18 = vadd.f32 %v4555_v23, %v4554_v41  ;;  %v4591_v26 = vadd.f32 %v4590_v25, %v4589_v42 }
 0xc21   : > { %v4060_v31 = vadd.f32 %v4556_v18, %v4414_v44 }
 0xc23   : > { %v4130_v34 = vadd.f32 %v4591_v26, %v4060_v31 }
 0xc25   : > { %v4133_v38 = vadd.f32 %v4130_v34, %v6424_v10 }
 0xc27   : > { %4134 = vst [vmem:[#allocation2] sm:$0xff] %v4133_v38  ;;  %4135 = vst [vmem:[#allocation14] sm:$0xff] %v4133_v38 }
 0xc28   : > { %5425 = shalt.err (!%p5422_p7)
}
 0xc29   : > { %s6695_s24 = sld [smem:[#allocation32_spill]] }
 0xc2f   : > { %s5426_s14 = scalar_lea.hbm %s6695_s24, 128 }
 0xc30   : > { %p5427_p12 = scmp.ne.s32.totalorder %s6695_s24, %s5426_s14  ;;  %p5432_p2 = scmp.lt.u32.totalorder %s5426_s14, %s6695_s24 }
 0xc32   : > { %p5428_p5 = pnand %p5427_p12, %p5080_p13 }
 0xc34   : > { %p5429_p11 = pneg %p5428_p5 }
 0xc36   : > { %p5434_p10 = pnand %p5432_p2, %p5429_p11 }
 0xc38   : > { %5437 = shalt.err (!%p5434_p10)
}
 0xc39   : > { %5049 = dma.vmem_to_hbm [thread:$0]  (%p5080_p13), %s4144_s10, 128, %s6695_s24, [#allocation6]  }
 0xc3a   : > { %5467 = dma.done.wait (%p5080_p13), [#allocation6], 128  }
 0xc3b   : > { %5469 = vsyncadd (%p5080_p13), [#allocation6], 4294967168 }
 0xc3c PF: > { %s6696_s20 = sld [smem:[#allocation20_spill]]  ;;  %s6697_s28 = sld [smem:[#allocation19_spill]] }
 0xc3d   : > { %s6698_s19 = sld [smem:[#allocation21_spill]]  ;;  %s6699_s17 = smov %s5476_s18 }
 0xc42   : > { %p21_p3 = scmp.ge.s32.totalorder %s6696_s20, 4   ;;  %s6700_s18 = smov %s6697_s28 }
 0xc44   :  { %23 = sbr.rel (!%p21_p3) target bundleno = 15 (0xf), region = 168 }
 0xc4b   :  { %4156 = vsyncpa [#allocation5], 1 }
 0xc4c   :  { %4158 = vsyncpa [#allocation5 + $0x1], 1 }
 0xc4d   :  { %4159 = vsyncpa [#allocation8], 1 }
 0xc4e   :  { %4160 = vsyncpa [#allocation6], 1 }
 0xc4f   :  { %4162 = vsyncpa [#allocation6 + $0x1], 1 }

</bundles_post_ra>
